<compile_context>
chip_gen: v6e
topology: v6e:2x2x1
jax: 0.10.0
libtpu: 0.0.40
codegen_flags: <defaults>
</compile_context>

<pallas_src>
import math

import jax
import jax.numpy as jnp
from jax.experimental import pallas as pl
from jax.experimental.pallas import tpu as pltpu


def daa_kernel(ab_ref, x_ref, ds_ref, mb_ref,
               wq_ref, bq_ref, wk_ref, bk_ref, wv_ref, bv_ref,
               wo_ref, bo_ref, g_ref, emb_ref, o_ref):
    Bt, S, D = x_ref.shape

    x_bf = x_ref[...]                       # (Bt, S, D) bf16
    x2 = x_bf.reshape(Bt * S, D)
    ds = ds_ref[...]                        # (Bt, S) f32, RAW docking scores
    mb = mb_ref[...]                        # (Bt, S) f32, additive bias 0 / -inf

    # ---- K / V projections: bf16 MXU, f32 accumulation ----
    k3 = (jnp.dot(x2, wk_ref[...], preferred_element_type=jnp.float32)
          + bk_ref[...]).reshape(Bt, S, D)
    v3 = (jnp.dot(x2, wv_ref[...], preferred_element_type=jnp.float32)
          + bv_ref[...]).reshape(Bt, S, D)

    # ---- Q only at position 0 (the only query row the module uses);
    #      1/sqrt(head_dim) is pre-folded into wq/bq by the wrapper ----
    q0 = jnp.dot(x_bf[:, 0, :], wq_ref[...],
                 preferred_element_type=jnp.float32) + bq_ref[...]        # (Bt, D)

    # ---- per-head scores, replicated across each head's hd lanes, via the
    #      block-diagonal Gram matrix G = E @ E^T (one D-lane-wide matmul) ----
    kq = (k3 * q0[:, None, :]).astype(g_ref.dtype)                        # (Bt,S,D) bf16
    scores = jnp.dot(kq.reshape(Bt * S, D), g_ref[...],
                     preferred_element_type=jnp.float32).reshape(Bt, S, D)
    scores = scores + mb[:, :, None]        # additive mask (0 / -inf)
    # NOTE: a fully-masked sequence yields NaN (exp(-inf - -inf)), identical
    # to the PyTorch / pure-JAX reference behaviour.

    m = jnp.max(scores, axis=1, keepdims=True)                            # (Bt,1,D)
    e = jnp.exp(scores - m)                                               # (Bt,S,D)
    denom = jnp.sum(e, axis=1)                                            # (Bt, D)

    # deferred softmax normalization: one approx reciprocal per (b, d)
    ctx = jnp.sum(e * v3, axis=1)                                         # (Bt, D)
    ctx = ctx * pl.reciprocal(denom, approx=True)

    # ---- alpha*mean + beta*docking as ONE fused weighted reduction over S ----
    alpha = ab_ref[0]
    beta = ab_ref[1]
    dsm = jnp.where(mb < 0.0, 0.0, ds)      # masked docking scores
    w = alpha * (1.0 / S) + beta * dsm                                    # (Bt, S)
    combined = jnp.sum(w[:, :, None] * x_bf.astype(jnp.float32), axis=1) + ctx

    # ---- out_proj (small matmul, kept in f32 for precision) ----
    out = jnp.dot(combined, wo_ref[...],
                  preferred_element_type=jnp.float32) + bo_ref[...]       # (Bt, Dout)

    # ---- replace_empty_emb uses the RAW (pre-mask) docking scores ----
    empty = jnp.sum(ds, axis=1, keepdims=True) == 0.0                     # (Bt, 1)
    out = jnp.where(empty, emb_ref[...], out)

    o_ref[...] = out.astype(o_ref.dtype)

    # TODO(synk): PyTorch stores prediction_weight.{docking,attention}_weight as
    # detached numpy arrays (host-side diagnostic side effect); not representable
    # inside a Pallas kernel and not part of the returned tensor.


def _vmem_capacity_bytes():
    try:
        return int(pltpu.get_tpu_info().vmem_capacity_bytes)
    except Exception:
        return 64 * 1024 * 1024     # conservative fallback: v7x per-TensorCore VMEM


def _pick_block_b(B, S, D, Dout, weight_bytes, vmem_budget):
    """Largest batch block that (a) satisfies the (8,*) sublane rule for the
    2-D ds/mask/output blocks (multiple of 8, or the full batch), (b) fits the
    per-generation VMEM budget, and (c) leaves >= 2 grid steps when possible
    (so ("parallel",) can shard across v7x's two TensorCores; the extra step
    costs only ~0.35us on single-TC v5e/v6e)."""
    cands = sorted({c for c in range(8, B + 1, 8) if B % c == 0} | {B})

    def step_bytes(bb):
        x_in = 2 * bb * S * D * 2           # bf16 x block, double-buffered
        small_in = 2 * 2 * bb * S * 4       # ds + mask bias, double-buffered
        temps = 8 * bb * S * D * 4          # k, v, kq, scores, e, ... (f32, slack)
        out = 2 * bb * Dout * 4
        return 2 * weight_bytes + x_in + small_in + temps + out   # weights dbl-buffered

    fitting = [c for c in cands if step_bytes(c) <= vmem_budget]
    if not fitting:
        return cands[0]
    multi = [c for c in fitting if B // c >= 2]
    return max(multi) if multi else max(fitting)


def docking_aware_attention(x, docking_scores, params, mask=None, block_b=None):
    """x: (B, S, D); docking_scores: (B, S); mask: optional (B, S).
    Returns (B, 1, Dout), matching the PyTorch module's output."""
    B, S, D = x.shape
    Dout = params["wo"].shape[1]
    H = params["num_heads"]
    assert D % H == 0
    hd = D // H
    f32, bf16 = jnp.float32, jnp.bfloat16

    if mask is None:
        mask = jnp.ones((B, S), f32)
    mask = mask.astype(f32)
    ds2 = docking_scores.astype(f32)                       # raw scores (empty check)
    # additive attention-mask bias; -inf (not -1e30) preserves the reference's
    # NaN behaviour for fully-masked rows
    mbias = jnp.where(mask > 0, 0.0, -jnp.inf).astype(f32)

    # fold 1/sqrt(head_dim) into the Q projection; bf16 weights for the MXU
    scale = 1.0 / math.sqrt(hd)
    wq = (params["wq"] * scale).astype(bf16)
    bq = (params["bq"] * scale).reshape(1, D).astype(f32)
    wk = params["wk"].astype(bf16)
    bk = params["bk"].reshape(1, D).astype(f32)
    wv = params["wv"].astype(bf16)
    bv = params["bv"].reshape(1, D).astype(f32)
    wo = params["wo"].astype(f32)
    bo = params["bo"].reshape(1, Dout).astype(f32)
    emb = params["emb"].reshape(1, Dout).astype(f32)

    # block-diagonal Gram matrix G = E @ E^T: ones inside each head's hd x hd
    # block; (k*q) @ G replicates each head's score across its hd lanes
    head_id = jnp.arange(D) // hd
    g = (head_id[:, None] == head_id[None, :]).astype(bf16)

    x_bf = x.astype(bf16)
    ab = jnp.array([params["alpha"], params["beta"]], f32)   # SMEM scalars

    weight_bytes = ((3 * D * D + D * D) * 2          # wq, wk, wv, G (bf16)
                    + D * Dout * 4                   # wo (f32)
                    + (3 * D + 2 * Dout) * 4)        # biases + emb (f32)

    vmem_cap = _vmem_capacity_bytes()
    vmem_budget = max(32 << 20, min(int(0.6 * vmem_cap), 96 << 20))

    if block_b is None:
        block_b = _pick_block_b(B, S, D, Dout, weight_bytes, vmem_budget)
    assert B % block_b == 0, (B, block_b)

    flops = (2 * B * S * D * (2 * D)      # K, V projections
             + 2 * B * D * D              # Q at position 0
             + 2 * B * S * D * D          # score Gram matmul
             + 2 * B * D * Dout           # out_proj
             + 12 * B * S * D)            # elementwise / reductions
    cost = pl.CostEstimate(
        flops=int(flops),
        transcendentals=int(B * S * D),
        bytes_accessed=int(B * S * D * 2 + 2 * B * S * 4
                           + weight_bytes + B * Dout * 4))

    const = lambda shp: pl.BlockSpec(shp, lambda b: (0, 0))

    out = pl.pallas_call(
        daa_kernel,
        out_shape=jax.ShapeDtypeStruct((B, Dout), f32),
        grid=(B // block_b,),
        in_specs=[
            pl.BlockSpec(memory_space=pltpu.MemorySpace.SMEM),     # alpha/beta
            pl.BlockSpec((block_b, S, D), lambda b: (b, 0, 0)),    # x (bf16)
            pl.BlockSpec((block_b, S), lambda b: (b, 0)),          # raw docking scores
            pl.BlockSpec((block_b, S), lambda b: (b, 0)),          # mask bias (0/-inf)
            const((D, D)), const((1, D)),                          # wq, bq (scaled)
            const((D, D)), const((1, D)),                          # wk, bk
            const((D, D)), const((1, D)),                          # wv, bv
            const((D, Dout)), const((1, Dout)),                    # wo, bo
            const((D, D)),                                         # G = E @ E^T
            const((1, Dout)),                                      # empty embedding
        ],
        out_specs=pl.BlockSpec((block_b, Dout), lambda b: (b, 0)),
        compiler_params=pltpu.CompilerParams(
            dimension_semantics=("parallel",),
            vmem_limit_bytes=vmem_budget),
        cost_estimate=cost,
    )(ab, x_bf, ds2, mbias, wq, bq, wk, bk, wv, bv, wo, bo, g, emb)

    return out.reshape(B, 1, Dout)


def reference(x, ds, mask, params):
    """Pure-JAX f32 mirror of the PyTorch forward (DaaType.ALL, lin_attn=False)."""
    B, S, D = x.shape
    H = params["num_heads"]
    hd = D // H
    x_mean = x.mean(axis=1, keepdims=True)
    dsm = jnp.where(mask > 0, ds, 0.0)
    x_dock = jnp.sum(dsm[..., None] * x, axis=1, keepdims=True)

    def proj(w, b):
        return (x @ w + b).reshape(B, S, H, hd).transpose(0, 2, 1, 3)

    Q = proj(params["wq"], params["bq"])
    K = proj(params["wk"], params["bk"])
    V = proj(params["wv"], params["bv"])
    attn = (Q @ K.transpose(0, 1, 3, 2)) / math.sqrt(hd)
    attn = jnp.where(mask[:, None, None, :] > 0, attn, -jnp.inf)
    attn = jax.nn.softmax(attn, axis=-1)
    ctx = (attn @ V).transpose(0, 2, 1, 3).reshape(B, S, D)
    x_att = ctx[:, 0:1, :]

    comb = params["alpha"] * x_mean + params["beta"] * x_dock + x_att
    out = comb @ params["wo"] + params["bo"]
    empty = (ds.sum(axis=1) == 0)[:, None, None]
    out = jnp.where(empty, params["emb"][None], out)
    return out


def init_params(key, input_dim, output_dim, num_heads):
    ks = jax.random.split(key, 10)
    s = 0.02
    return {
        "num_heads": num_heads,
        "wq": s * jax.random.normal(ks[0], (input_dim, input_dim), jnp.float32),
        "bq": s * jax.random.normal(ks[1], (input_dim,), jnp.float32),
        "wk": s * jax.random.normal(ks[2], (input_dim, input_dim), jnp.float32),
        "bk": s * jax.random.normal(ks[3], (input_dim,), jnp.float32),
        "wv": s * jax.random.normal(ks[4], (input_dim, input_dim), jnp.float32),
        "bv": s * jax.random.normal(ks[5], (input_dim,), jnp.float32),
        "wo": s * jax.random.normal(ks[6], (input_dim, output_dim), jnp.float32),
        "bo": s * jax.random.normal(ks[7], (output_dim,), jnp.float32),
        "emb": jax.random.normal(ks[8], (1, output_dim), jnp.float32),
        "alpha": jnp.float32(1.0),
        "beta": jnp.float32(1.0),
    }


if __name__ == "__main__":
    B, S, D_in, D_out, H = 16, 8, 32, 32, 4

    key = jax.random.PRNGKey(0)
    kx, kd, kp = jax.random.split(key, 3)

    x = jax.random.normal(kx, (B, S, D_in), jnp.float32)
    docking_scores = jax.nn.relu(jax.random.normal(kd, (B, S), jnp.float32))
    # two batch elements (one per grid block) with all-zero docking scores to
    # exercise the empty-embedding replacement path
    docking_scores = docking_scores.at[1].set(0.0).at[9].set(0.0)
    # mask out the last two sequence positions
    mask = jnp.ones((B, S), jnp.float32).at[:, -2:].set(0.0)

    params = init_params(kp, D_in, D_out, H)

    out = docking_aware_attention(x, docking_scores, params, mask=mask)
    out = jax.block_until_ready(out)

    ref = reference(x, docking_scores, mask, params)
    assert out.shape == (B, 1, D_out), out.shape
    assert jnp.allclose(out, ref, atol=2e-3, rtol=2e-3), float(jnp.max(jnp.abs(out - ref)))

    print("KERNEL_OK")
</pallas_src>

<mosaic_0001>
module attributes {stable_mosaic.version = 11 : i64} {
  func.func @daa_kernel(%arg0: i32, %arg1: memref<2xf32, #tpu.memory_space<smem>>, %arg2: memref<8x8x32xbf16, #tpu.memory_space<vmem>>, %arg3: memref<8x8xf32, #tpu.memory_space<vmem>>, %arg4: memref<8x8xf32, #tpu.memory_space<vmem>>, %arg5: memref<32x32xbf16, #tpu.memory_space<vmem>>, %arg6: memref<1x32xf32, #tpu.memory_space<vmem>>, %arg7: memref<32x32xbf16, #tpu.memory_space<vmem>>, %arg8: memref<1x32xf32, #tpu.memory_space<vmem>>, %arg9: memref<32x32xbf16, #tpu.memory_space<vmem>>, %arg10: memref<1x32xf32, #tpu.memory_space<vmem>>, %arg11: memref<32x32xf32, #tpu.memory_space<vmem>>, %arg12: memref<1x32xf32, #tpu.memory_space<vmem>>, %arg13: memref<32x32xbf16, #tpu.memory_space<vmem>>, %arg14: memref<1x32xf32, #tpu.memory_space<vmem>>, %arg15: memref<8x32xf32, #tpu.memory_space<vmem>>) attributes {dimension_semantics = [#tpu.dimension_semantics<parallel>], iteration_bounds = array<i64: 2>, scalar_prefetch = 0 : i64, scratch_operands = 0 : i64, tpu.core_type = #tpu.core_type<tc>, window_params = [{transform_indices = @transform_0, window_bounds = array<i64: 2>}, {transform_indices = @transform_1, window_bounds = array<i64: 8, 8, 32>}, {transform_indices = @transform_2, window_bounds = array<i64: 8, 8>}, {transform_indices = @transform_3, window_bounds = array<i64: 8, 8>}, {pipeline_mode = #tpu.pipeline_mode<synchronous>, transform_indices = @transform_4, window_bounds = array<i64: 32, 32>}, {pipeline_mode = #tpu.pipeline_mode<synchronous>, transform_indices = @transform_5, window_bounds = array<i64: 1, 32>}, {pipeline_mode = #tpu.pipeline_mode<synchronous>, transform_indices = @transform_6, window_bounds = array<i64: 32, 32>}, {pipeline_mode = #tpu.pipeline_mode<synchronous>, transform_indices = @transform_7, window_bounds = array<i64: 1, 32>}, {pipeline_mode = #tpu.pipeline_mode<synchronous>, transform_indices = @transform_8, window_bounds = array<i64: 32, 32>}, {pipeline_mode = #tpu.pipeline_mode<synchronous>, transform_indices = @transform_9, window_bounds = array<i64: 1, 32>}, {pipeline_mode = #tpu.pipeline_mode<synchronous>, transform_indices = @transform_10, window_bounds = array<i64: 32, 32>}, {pipeline_mode = #tpu.pipeline_mode<synchronous>, transform_indices = @transform_11, window_bounds = array<i64: 1, 32>}, {pipeline_mode = #tpu.pipeline_mode<synchronous>, transform_indices = @transform_12, window_bounds = array<i64: 32, 32>}, {pipeline_mode = #tpu.pipeline_mode<synchronous>, transform_indices = @transform_13, window_bounds = array<i64: 1, 32>}, {transform_indices = @transform_14, window_bounds = array<i64: 8, 32>}]} {
    %c0 = arith.constant 0 : index
    %c0_0 = arith.constant 0 : index
    %c0_1 = arith.constant 0 : index
    %0 = vector.load %arg2[%c0, %c0_0, %c0_1] : memref<8x8x32xbf16, #tpu.memory_space<vmem>>, vector<8x8x32xbf16>
    %1 = vector.shape_cast %0 : vector<8x8x32xbf16> to vector<64x32xbf16>
    %c0_2 = arith.constant 0 : index
    %c0_3 = arith.constant 0 : index
    %2 = vector.load %arg3[%c0_2, %c0_3] : memref<8x8xf32, #tpu.memory_space<vmem>>, vector<8x8xf32>
    %c0_4 = arith.constant 0 : index
    %c0_5 = arith.constant 0 : index
    %3 = vector.load %arg4[%c0_4, %c0_5] : memref<8x8xf32, #tpu.memory_space<vmem>>, vector<8x8xf32>
    %c0_6 = arith.constant 0 : index
    %c0_7 = arith.constant 0 : index
    %4 = vector.load %arg7[%c0_6, %c0_7] : memref<32x32xbf16, #tpu.memory_space<vmem>>, vector<32x32xbf16>
    %cst = arith.constant dense<0.000000e+00> : vector<64x32xf32>
    %5 = tpu.matmul %1, %4, %cst {dimension_numbers = #tpu.dot_dimension_numbers<[1], [0], [0], [1], [0, 0, 1, 1], [], []>} : vector<64x32xbf16>, vector<32x32xbf16>, vector<64x32xf32> -> vector<64x32xf32>
    %c0_8 = arith.constant 0 : index
    %c0_9 = arith.constant 0 : index
    %6 = vector.load %arg8[%c0_8, %c0_9] : memref<1x32xf32, #tpu.memory_space<vmem>>, vector<1x32xf32>
    %7 = vector.broadcast %6 : vector<1x32xf32> to vector<64x32xf32>
    %8 = arith.addf %5, %7 : vector<64x32xf32>
    %9 = vector.shape_cast %8 : vector<64x32xf32> to vector<8x8x32xf32>
    %c0_10 = arith.constant 0 : index
    %c0_11 = arith.constant 0 : index
    %10 = vector.load %arg9[%c0_10, %c0_11] : memref<32x32xbf16, #tpu.memory_space<vmem>>, vector<32x32xbf16>
    %cst_12 = arith.constant dense<0.000000e+00> : vector<64x32xf32>
    %11 = tpu.matmul %1, %10, %cst_12 {dimension_numbers = #tpu.dot_dimension_numbers<[1], [0], [0], [1], [0, 0, 1, 1], [], []>} : vector<64x32xbf16>, vector<32x32xbf16>, vector<64x32xf32> -> vector<64x32xf32>
    %c0_13 = arith.constant 0 : index
    %c0_14 = arith.constant 0 : index
    %12 = vector.load %arg10[%c0_13, %c0_14] : memref<1x32xf32, #tpu.memory_space<vmem>>, vector<1x32xf32>
    %13 = vector.broadcast %12 : vector<1x32xf32> to vector<64x32xf32>
    %14 = arith.addf %11, %13 : vector<64x32xf32>
    %15 = vector.shape_cast %14 : vector<64x32xf32> to vector<8x8x32xf32>
    %16 = vector.extract_strided_slice %0 {offsets = [0, 0, 0], sizes = [8, 1, 32], strides = [1, 1, 1]} : vector<8x8x32xbf16> to vector<8x1x32xbf16>
    %17 = vector.shape_cast %16 : vector<8x1x32xbf16> to vector<8x32xbf16>
    %c0_15 = arith.constant 0 : index
    %c0_16 = arith.constant 0 : index
    %18 = vector.load %arg5[%c0_15, %c0_16] : memref<32x32xbf16, #tpu.memory_space<vmem>>, vector<32x32xbf16>
    %cst_17 = arith.constant dense<0.000000e+00> : vector<8x32xf32>
    %19 = tpu.matmul %17, %18, %cst_17 {dimension_numbers = #tpu.dot_dimension_numbers<[1], [0], [0], [1], [0, 0, 1, 1], [], []>} : vector<8x32xbf16>, vector<32x32xbf16>, vector<8x32xf32> -> vector<8x32xf32>
    %c0_18 = arith.constant 0 : index
    %c0_19 = arith.constant 0 : index
    %20 = vector.load %arg6[%c0_18, %c0_19] : memref<1x32xf32, #tpu.memory_space<vmem>>, vector<1x32xf32>
    %21 = vector.broadcast %20 : vector<1x32xf32> to vector<8x32xf32>
    %22 = arith.addf %19, %21 : vector<8x32xf32>
    %23 = vector.shape_cast %22 : vector<8x32xf32> to vector<8x1x32xf32>
    %24 = vector.broadcast %23 : vector<8x1x32xf32> to vector<8x8x32xf32>
    %25 = arith.mulf %9, %24 : vector<8x8x32xf32>
    %26 = arith.truncf %25 : vector<8x8x32xf32> to vector<8x8x32xbf16>
    %27 = vector.shape_cast %26 : vector<8x8x32xbf16> to vector<64x32xbf16>
    %c0_20 = arith.constant 0 : index
    %c0_21 = arith.constant 0 : index
    %28 = vector.load %arg13[%c0_20, %c0_21] : memref<32x32xbf16, #tpu.memory_space<vmem>>, vector<32x32xbf16>
    %cst_22 = arith.constant dense<0.000000e+00> : vector<64x32xf32>
    %29 = tpu.matmul %27, %28, %cst_22 {dimension_numbers = #tpu.dot_dimension_numbers<[1], [0], [0], [1], [0, 0, 1, 1], [], []>} : vector<64x32xbf16>, vector<32x32xbf16>, vector<64x32xf32> -> vector<64x32xf32>
    %30 = vector.shape_cast %29 : vector<64x32xf32> to vector<8x8x32xf32>
    %31 = vector.shape_cast %3 : vector<8x8xf32> to vector<8x8x1xf32>
    %32 = vector.broadcast %31 : vector<8x8x1xf32> to vector<8x8x32xf32>
    %33 = arith.addf %30, %32 : vector<8x8x32xf32>
    %cst_23 = arith.constant dense<0xFF800000> : vector<8x32xf32>
    %34 = vector.multi_reduction <maximumf>, %33, %cst_23 [1] : vector<8x8x32xf32> to vector<8x32xf32>
    %35 = vector.shape_cast %34 : vector<8x32xf32> to vector<8x1x32xf32>
    %36 = vector.broadcast %35 : vector<8x1x32xf32> to vector<8x8x32xf32>
    %37 = arith.subf %33, %36 : vector<8x8x32xf32>
    %38 = math.exp %37 : vector<8x8x32xf32>
    %cst_24 = arith.constant dense<0.000000e+00> : vector<8x32xf32>
    %39 = vector.multi_reduction <add>, %38, %cst_24 [1] : vector<8x8x32xf32> to vector<8x32xf32>
    %40 = arith.mulf %38, %15 : vector<8x8x32xf32>
    %cst_25 = arith.constant dense<0.000000e+00> : vector<8x32xf32>
    %41 = vector.multi_reduction <add>, %40, %cst_25 [1] : vector<8x8x32xf32> to vector<8x32xf32>
    %42 = tpu.reciprocal %39 {approx = true} : vector<8x32xf32> -> vector<8x32xf32>
    %43 = arith.mulf %41, %42 : vector<8x32xf32>
    %c0_26 = arith.constant 0 : index
    %44 = memref.load %arg1[%c0_26] : memref<2xf32, #tpu.memory_space<smem>>
    %c1 = arith.constant 1 : index
    %45 = memref.load %arg1[%c1] : memref<2xf32, #tpu.memory_space<smem>>
    %cst_27 = arith.constant 0.000000e+00 : f32
    %46 = vector.broadcast %cst_27 : f32 to vector<8x8xf32>
    %47 = arith.cmpf olt, %3, %46 : vector<8x8xf32>
    %cst_28 = arith.constant 0.000000e+00 : f32
    %48 = vector.broadcast %cst_28 : f32 to vector<8x8xf32>
    %49 = arith.select %47, %48, %2 : vector<8x8xi1>, vector<8x8xf32>
    %cst_29 = arith.constant 1.250000e-01 : f32
    %50 = arith.mulf %44, %cst_29 : f32
    %51 = vector.broadcast %45 : f32 to vector<8x8xf32>
    %52 = arith.mulf %51, %49 : vector<8x8xf32>
    %53 = vector.broadcast %50 : f32 to vector<8x8xf32>
    %54 = arith.addf %53, %52 : vector<8x8xf32>
    %55 = vector.shape_cast %54 : vector<8x8xf32> to vector<8x8x1xf32>
    %56 = arith.extf %0 : vector<8x8x32xbf16> to vector<8x8x32xf32>
    %57 = vector.broadcast %55 : vector<8x8x1xf32> to vector<8x8x32xf32>
    %58 = arith.mulf %57, %56 : vector<8x8x32xf32>
    %cst_30 = arith.constant dense<0.000000e+00> : vector<8x32xf32>
    %59 = vector.multi_reduction <add>, %58, %cst_30 [1] : vector<8x8x32xf32> to vector<8x32xf32>
    %60 = arith.addf %59, %43 : vector<8x32xf32>
    %c0_31 = arith.constant 0 : index
    %c0_32 = arith.constant 0 : index
    %61 = vector.load %arg11[%c0_31, %c0_32] : memref<32x32xf32, #tpu.memory_space<vmem>>, vector<32x32xf32>
    %cst_33 = arith.constant dense<0.000000e+00> : vector<8x32xf32>
    %62 = tpu.matmul %60, %61, %cst_33 {dimension_numbers = #tpu.dot_dimension_numbers<[1], [0], [0], [1], [0, 0, 1, 1], [], []>} : vector<8x32xf32>, vector<32x32xf32>, vector<8x32xf32> -> vector<8x32xf32>
    %c0_34 = arith.constant 0 : index
    %c0_35 = arith.constant 0 : index
    %63 = vector.load %arg12[%c0_34, %c0_35] : memref<1x32xf32, #tpu.memory_space<vmem>>, vector<1x32xf32>
    %64 = vector.broadcast %63 : vector<1x32xf32> to vector<8x32xf32>
    %65 = arith.addf %62, %64 : vector<8x32xf32>
    %cst_36 = arith.constant dense<0.000000e+00> : vector<8xf32>
    %66 = vector.multi_reduction <add>, %2, %cst_36 [1] : vector<8x8xf32> to vector<8xf32>
    %67 = vector.shape_cast %66 : vector<8xf32> to vector<8x1xf32>
    %cst_37 = arith.constant 0.000000e+00 : f32
    %68 = vector.broadcast %cst_37 : f32 to vector<8x1xf32>
    %69 = arith.cmpf oeq, %67, %68 : vector<8x1xf32>
    %c0_38 = arith.constant 0 : index
    %c0_39 = arith.constant 0 : index
    %70 = vector.load %arg14[%c0_38, %c0_39] : memref<1x32xf32, #tpu.memory_space<vmem>>, vector<1x32xf32>
    %71 = vector.shape_cast %69 : vector<8x1xi1> to vector<8x1xi1>
    %72 = vector.broadcast %71 : vector<8x1xi1> to vector<8x32xi1>
    %73 = vector.shape_cast %70 : vector<1x32xf32> to vector<1x32xf32>
    %74 = vector.broadcast %73 : vector<1x32xf32> to vector<8x32xf32>
    %75 = arith.select %72, %74, %65 : vector<8x32xi1>, vector<8x32xf32>
    %c0_40 = arith.constant 0 : index
    %c0_41 = arith.constant 0 : index
    %76 = vector.load %arg15[%c0_40, %c0_41] : memref<8x32xf32, #tpu.memory_space<vmem>>, vector<8x32xf32>
    tpu.vector_store %arg15[%c0_40, %c0_41], %75 {strides = array<i32>} : memref<8x32xf32, #tpu.memory_space<vmem>>, vector<8x32xf32>,
    return
  }
  func.func @transform_0(%arg0: i32) -> i32 {
    %c0_i32 = arith.constant 0 : i32
    %c0_i32_0 = arith.constant 0 : i32
    return %c0_i32 : i32
  }
  func.func @transform_1(%arg0: i32) -> (i32, i32, i32) {
    %c0_i32 = arith.constant 0 : i32
    %c0_i32_0 = arith.constant 0 : i32
    %c0_i32_1 = arith.constant 0 : i32
    return %arg0, %c0_i32, %c0_i32_0 : i32, i32, i32
  }
  func.func @transform_2(%arg0: i32) -> (i32, i32) {
    %c0_i32 = arith.constant 0 : i32
    %c0_i32_0 = arith.constant 0 : i32
    return %arg0, %c0_i32 : i32, i32
  }
  func.func @transform_3(%arg0: i32) -> (i32, i32) {
    %c0_i32 = arith.constant 0 : i32
    %c0_i32_0 = arith.constant 0 : i32
    return %arg0, %c0_i32 : i32, i32
  }
  func.func @transform_4(%arg0: i32) -> (i32, i32) {
    %c0_i32 = arith.constant 0 : i32
    %c0_i32_0 = arith.constant 0 : i32
    %c0_i32_1 = arith.constant 0 : i32
    return %c0_i32, %c0_i32_0 : i32, i32
  }
  func.func @transform_5(%arg0: i32) -> (i32, i32) {
    %c0_i32 = arith.constant 0 : i32
    %c0_i32_0 = arith.constant 0 : i32
    %c0_i32_1 = arith.constant 0 : i32
    return %c0_i32, %c0_i32_0 : i32, i32
  }
  func.func @transform_6(%arg0: i32) -> (i32, i32) {
    %c0_i32 = arith.constant 0 : i32
    %c0_i32_0 = arith.constant 0 : i32
    %c0_i32_1 = arith.constant 0 : i32
    return %c0_i32, %c0_i32_0 : i32, i32
  }
  func.func @transform_7(%arg0: i32) -> (i32, i32) {
    %c0_i32 = arith.constant 0 : i32
    %c0_i32_0 = arith.constant 0 : i32
    %c0_i32_1 = arith.constant 0 : i32
    return %c0_i32, %c0_i32_0 : i32, i32
  }
  func.func @transform_8(%arg0: i32) -> (i32, i32) {
    %c0_i32 = arith.constant 0 : i32
    %c0_i32_0 = arith.constant 0 : i32
    %c0_i32_1 = arith.constant 0 : i32
    return %c0_i32, %c0_i32_0 : i32, i32
  }
  func.func @transform_9(%arg0: i32) -> (i32, i32) {
    %c0_i32 = arith.constant 0 : i32
    %c0_i32_0 = arith.constant 0 : i32
    %c0_i32_1 = arith.constant 0 : i32
    return %c0_i32, %c0_i32_0 : i32, i32
  }
  func.func @transform_10(%arg0: i32) -> (i32, i32) {
    %c0_i32 = arith.constant 0 : i32
    %c0_i32_0 = arith.constant 0 : i32
    %c0_i32_1 = arith.constant 0 : i32
    return %c0_i32, %c0_i32_0 : i32, i32
  }
  func.func @transform_11(%arg0: i32) -> (i32, i32) {
    %c0_i32 = arith.constant 0 : i32
    %c0_i32_0 = arith.constant 0 : i32
    %c0_i32_1 = arith.constant 0 : i32
    return %c0_i32, %c0_i32_0 : i32, i32
  }
  func.func @transform_12(%arg0: i32) -> (i32, i32) {
    %c0_i32 = arith.constant 0 : i32
    %c0_i32_0 = arith.constant 0 : i32
    %c0_i32_1 = arith.constant 0 : i32
    return %c0_i32, %c0_i32_0 : i32, i32
  }
  func.func @transform_13(%arg0: i32) -> (i32, i32) {
    %c0_i32 = arith.constant 0 : i32
    %c0_i32_0 = arith.constant 0 : i32
    %c0_i32_1 = arith.constant 0 : i32
    return %c0_i32, %c0_i32_0 : i32, i32
  }
  func.func @transform_14(%arg0: i32) -> (i32, i32) {
    %c0_i32 = arith.constant 0 : i32
    %c0_i32_0 = arith.constant 0 : i32
    return %arg0, %c0_i32 : i32, i32
  }
}

</mosaic_0001>

<bundles_post_ra>
// kernel: tpu_custom_call.1
= control target key start
LH: loop header
LB: loop body
LE: loop exit
PB: predicated region body
PF: predicated region fallthrough
CT: control target
= control target key end

     0   :  { %s3092_s0 = inlined_call_operand.hbm [shape: f32[2], index: 0, kind: input, shape index: {}]   ;;  %s3093_s1 = inlined_call_operand.hbm [shape: bf16[16,8,32], index: 1, kind: input, shape index: {}]   ;;  %s3094_s2 = inlined_call_operand.vmem [shape: f32[16,8], index: 2, kind: input, shape index: {}]   ;;  %s3095_s3 = inlined_call_operand.vmem [shape: f32[16,8], index: 3, kind: input, shape index: {}]   ;;  %s3096_s4 = inlined_call_operand.vmem [shape: bf16[32,32], index: 4, kind: input, shape index: {}]   ;;  %s3097_s5 = inlined_call_operand.hbm [shape: f32[1,32], index: 5, kind: input, shape index: {}]   ;;  %s3098_s6 = inlined_call_operand.vmem [shape: bf16[32,32], index: 6, kind: input, shape index: {}]   ;;  %s3099_s7 = inlined_call_operand.hbm [shape: f32[1,32], index: 7, kind: input, shape index: {}]   ;;  %s3100_s8 = inlined_call_operand.hbm [shape: bf16[32,32], index: 8, kind: input, shape index: {}]   ;;  %s3101_s9 = inlined_call_operand.hbm [shape: f32[1,32], index: 9, kind: input, shape index: {}]   ;;  %s3102_s10 = inlined_call_operand.vmem [shape: f32[32,32], index: 10, kind: input, shape index: {}]   ;;  %s3103_s11 = inlined_call_operand.vmem [shape: f32[1,32], index: 11, kind: input, shape index: {}]   ;;  %s3104_s12 = inlined_call_operand.hbm [shape: bf16[32,32], index: 12, kind: input, shape index: {}]   ;;  %s3105_s13 = inlined_call_operand.vmem [shape: f32[1,32], index: 13, kind: input, shape index: {}]   ;;  %s3106_s14 = inlined_call_operand.hbm [shape: f32[16,32], index: 14, kind: output, shape index: {}]  }
   0x1   :  { %3115 = sst [smem:[#allocation22_spill]] %s3092_s0 }
   0x2   :  { %3116 = sst [smem:[#allocation23_spill]] %s3093_s1 }
   0x3   :  { %3117 = sst [smem:[#allocation24_spill]] %s3097_s5 }
   0x4   :  { %3118 = sst [smem:[#allocation25_spill]] %s3099_s7 }
   0x5   :  { %3119 = sst [smem:[#allocation26_spill]] %s3100_s8 }
   0x6   :  { %3120 = sst [smem:[#allocation27_spill]] %s3102_s10 }
   0x7   :  { %3121 = sst [smem:[#allocation28_spill]] %s3103_s11 }
   0x8   :  { %3122 = sst [smem:[#allocation29_spill]] %s3105_s13 }
   0x9   :  { %3123 = sst [smem:[#allocation30_spill]] %s3106_s14 }
   0xa   :  { %19 = vsyncpa [#allocation5], 0 }
   0xb   :  { %20 = vsyncpa [#allocation3], 0 }
   0xc   :  { %22 = vsyncpa [#allocation3 + $0x1], 0 }
   0xd   :  { %23 = vsyncpa [#allocation8], 0 }
   0xe   :  { %24 = vsyncpa [#allocation11], 0 }
   0xf   :  { %25 = vsyncpa [#allocation14], 0 }
  0x10   :  { %26 = vsyncpa [#allocation4], 0 }
  0x11   :  { %28 = vsyncpa [#allocation4 + $0x1], 0  ;;  %s2510_s29 = smov 0   ;;  %s2512_s30 = smov 0  }
  0x12   :  { %s2514_s15 = smov 0   ;;  %s2516_s16 = smov 0  }
  0x13 LB: > { %s2422_s17 = smov [#allocation7]   ;;  %s2531_s19 = sadd.s32 4294967295, %s2420_s16   ;;  %s2420_s16 = sphi %s2516_s16, %s3160_s16   ;;  %s2416_s15 = sphi %s2514_s15, %s3159_s15   ;;  %s2412_s30 = sphi %s2512_s30, %s3158_s30   ;;  %s2408_s29 = sphi %s2510_s29, %s3157_s29  }
  0x14   : > { %s399_s18 = sshll.u32 %s2422_s17, 4  ;;  %p1851_p0 = scmp.ge.s32.totalorder %s2420_s16, 1  ;;  %s400_s18 = int_to_ptr.vmem [resolvable:$true] %s399_s18 }
  0x15   : > { %p3109_p1 = scmp.eq.s32.totalorder %s2531_s19, 0  ;;  %p374_p2 = scmp.lt.s32.totalorder %s2420_s16, 3 }
  0x16   : > { %s2423_s21 = smov [#allocation10]   ;;  %s2424_s24 = smov [#allocation9]  }
  0x17   : > { %p2536_p3 = pnand %p1851_p0, %p374_p2  ;;  %s423_s22 = sshll.u32 %s2423_s21, 4  ;;  %s2543_s22 = int_to_ptr.vmem [resolvable:$true] %s423_s22 }
  0x18   : > { %s413_s25 = sshll.u32 %s2424_s24, 4  ;;  %s2182_s27 = scalar_lea.vmem %s400_s18, 16  ;;  %s414_s25 = int_to_ptr.vmem [resolvable:$true] %s413_s25 }
  0x19   : > { %s3124_s20 = scalar_select %p2536_p3, 1, 0 }
  0x1a   : > { %p2035_p5 = pneg %p2536_p3  ;;  %p2183_p8 = scmp.ne.s32.totalorder %s400_s18, %s2182_s27 }
  0x1b   : > { %s2189_s28 = scalar_lea.vmem %s400_s18, 32  ;;  %p2190_p11 = scmp.lt.s32.totalorder %s400_s18, %s400_s18 }
  0x1c   : > { %p2547_p6 = pnand %p2035_p5, %p3109_p1  ;;  %p2191_p12 = scmp.lt.s32.totalorder %s2189_s28, %s2182_s27 }
  0x1e   : > { %p2553_p7 = pneg %p2547_p6  ;;  %p2192_p13 = por %p2191_p12, %p2190_p11 }
  0x20   : > { %p2185_p9 = pnand %p2183_p8, %p2553_p7 }
  0x22   : > { %p2186_p10 = pneg %p2185_p9 }
  0x24   : > { %p2193_p0 = pnand %p2192_p13, %p2186_p10 }
  0x26   : > { %2196 = shalt.err (!%p2193_p0)
}
  0x27   : > { %s3127_s5 = sld [smem:[#allocation24_spill]]  ;;  %s2208_s24 = scalar_lea.vmem %s2543_s22, 256 }
  0x28   : > { %p2209_p2 = scmp.ne.s32.totalorder %s2543_s22, %s2208_s24  ;;  %p2216_p9 = scmp.lt.s32.totalorder %s2543_s22, %s2543_s22 }
  0x29   : > { %p2217_p11 = scmp.lt.s32.totalorder %s2208_s24, %s2208_s24 }
  0x2a   : > { %p2211_p5 = pnand %p2209_p2, %p2553_p7 }
  0x2b   : > { %p2218_p10 = por %p2217_p11, %p2216_p9 }
  0x2c   : > { %p2212_p8 = pneg %p2211_p5 }
  0x2d   : > { %2041 = dma.hbm_to_vmem [thread:$0]  (!%p2547_p6), %s3127_s5, 16, %s400_s18, [#allocation8]  }
  0x2e   : > { %p2219_p12 = pnand %p2218_p10, %p2212_p8 }
  0x30   : > { %2222 = shalt.err (!%p2219_p12)
}
  0x31   : > { %s3110_s27 = smov 64   ;;  %s3111_s28 = smov 4  }
  0x32   : > { %s3128_s8 = sld [smem:[#allocation26_spill]]  ;;  %s2427_s21 = smov [#allocation2]  }
  0x33   : > { %s3129_s0 = sld [smem:[#allocation22_spill]]  ;;  %s2428_s14 = smov [#allocation12]  }
  0x34   : > { %s437_s13 = sshll.u32 %s2428_s14, 4  ;;  %s2245_s11 = scalar_lea.vmem %s414_s25, 16  ;;  %s438_s13 = int_to_ptr.vmem [resolvable:$true] %s437_s13 }
  0x35   : > { %p2246_p13 = scmp.ne.s32.totalorder %s414_s25, %s2245_s11  ;;  %s2252_s10 = scalar_lea.vmem %s414_s25, 32 }
  0x36   : > { %p2253_p5 = scmp.lt.s32.totalorder %s414_s25, %s414_s25  ;;  %p2254_p8 = scmp.lt.s32.totalorder %s2252_s10, %s2245_s11 }
  0x37   : > { %p2248_p0 = pnand %p2246_p13, %p2553_p7 }
  0x38   : > { %2047 = dma.hbm_to_vmem [thread:$0]  (!%p2547_p6), %s3128_s8, 256, %s2543_s22, [#allocation11], %s3110_s27, %s3110_s27, %s3111_s28  }
  0x39   : > { %2038 = dma.hbm_to_smem (!%p2547_p6), %s3129_s0, 16, %s2427_s21, [#allocation5]  }
  0x3a   : > { %p2249_p2 = pneg %p2248_p0  ;;  %p2255_p9 = por %p2254_p8, %p2253_p5 }
  0x3c   : > { %p2256_p11 = pnand %p2255_p9, %p2249_p2 }
  0x3e   : > { %2259 = shalt.err (!%p2256_p11)
}
  0x3f   : > { %s3130_s7 = sld [smem:[#allocation25_spill]]  ;;  %s2271_s5 = scalar_lea.vmem %s438_s13, 16 }
  0x40   : > { %p2272_p10 = scmp.ne.s32.totalorder %s438_s13, %s2271_s5  ;;  %s2278_s14 = scalar_lea.vmem %s438_s13, 32 }
  0x41   : > { %p2279_p0 = scmp.lt.s32.totalorder %s438_s13, %s438_s13  ;;  %p2280_p4 = scmp.lt.s32.totalorder %s2278_s14, %s2271_s5 }
  0x42   : > { %p2274_p12 = pnand %p2272_p10, %p2553_p7 }
  0x43   : > { %p2281_p1 = por %p2280_p4, %p2279_p0 }
  0x44   : > { %p2275_p13 = pneg %p2274_p12 }
  0x45   : > { %2044 = dma.hbm_to_vmem [thread:$0]  (!%p2547_p6), %s3130_s7, 16, %s414_s25, [#allocation8]  }
  0x46   : > { %p2282_p5 = pnand %p2281_p1, %p2275_p13 }
  0x48   : > { %2285 = shalt.err (!%p2282_p5)
}
  0x49   : > { %2050 = dma.hbm_to_vmem [thread:$0]  (!%p2547_p6), %s3101_s9, 16, %s438_s13, [#allocation11]  }
  0x4a   : > { %s2429_s25 = smov [#allocation13]  }
  0x4b   : > { %s453_s17 = sshll.u32 %s2429_s25, 4  ;;  %s454_s17 = int_to_ptr.vmem [resolvable:$true] %s453_s17 }
  0x4c   : > { %s2297_s21 = scalar_lea.vmem %s454_s17, 256  ;;  %p2305_p11 = scmp.lt.s32.totalorder %s454_s17, %s454_s17 }
  0x4d   : > { %p2298_p2 = scmp.ne.s32.totalorder %s454_s17, %s2297_s21  ;;  %p2306_p10 = scmp.lt.s32.totalorder %s2297_s21, %s2297_s21 }
  0x4f   : > { %p2300_p8 = pnand %p2298_p2, %p2553_p7  ;;  %p2307_p4 = por %p2306_p10, %p2305_p11 }
  0x51   : > { %p2301_p9 = pneg %p2300_p8 }
  0x53   : > { %p2308_p1 = pnand %p2307_p4, %p2301_p9 }
  0x55   : > { %2311 = shalt.err (!%p2308_p1)
}
  0x56   : > { %2053 = dma.hbm_to_vmem [thread:$0]  (!%p2547_p6), %s3104_s12, 256, %s454_s17, [#allocation14], %s3110_s27, %s3110_s27, %s3111_s28  }
  0x57   : > { %s1850_s23 = sadd.s32 4294967294, %s2420_s16   ;;  %s2610_s26 = sadd.s32 1, %s2420_s16  }
  0x58   : > { %s59_s22 = ssub.s32 %s2420_s16, %s2610_s26  ;;  %s62_s18 = sadd.s32 1, %s2416_s15 }
  0x59   : > { %p60_p7 = scmp.eq.s32.totalorder %s59_s22, 0  ;;  %p69_p12 = scmp.ne.s32.totalorder %s2416_s15, %s2412_s30 }
  0x5a   : > { %p70_p13 = scmp.eq.s32.totalorder %s2420_s16, 0  ;;  %p75_p0 = scmp.ne.s32.totalorder %s2412_s30, %s2408_s29 }
  0x5b   : > { %s2621_s5 = scalar_select %p60_p7, %s2416_s15, %s62_s18  }
  0x5c   : > { %p2623_p5 = por %p70_p13, %p69_p12  ;;  %p3132_p2 = scmp.eq.s32.totalorder %s2531_s19, 0 }
  0x5d   : > { %p361_p8 = scmp.eq.s32.totalorder %s2531_s19, 1  ;;  %p367_p9 = scmp.eq.s32.totalorder %s1850_s23, 1 }
  0x5e   : > { %p2629_p6 = por %p3132_p2, %p75_p0  ;;  %p2068_p11 = scmp.lt.s32.totalorder %s2420_s16, 2 }
  0x5f   : > { %s470_s11 = sand.u32 1, %s2416_s15   ;;  %p2636_p10 = por %p361_p8, %p69_p12 }
  0x60   : > { %s3133_s10 = scalar_select %p2629_p6, 1, 0 }
  0x61   : > { %s3134_s25 = scalar_select %p2636_p10, 1, 0 }
  0x62   : > { %p2640_p4 = por %p367_p9, %p75_p0  ;;  %s1859_s21 = sshll.u32 %s470_s11, 5 }
  0x63   : > { %s1921_s24 = sshll.u32 %s2420_s16, 9  ;;  %s3136_s1 = sld [smem:[#allocation23_spill]] }
  0x64   : > { %s3135_s17 = scalar_select %p2640_p4, 1, 0 }
  0x65   : > { %s474_s23 = scalar_lea.vmem [#allocation6], %s1859_s21  ;;  %p2654_p1 = pnand %p2068_p11, %p2623_p5 }
  0x66   : > { %s481_s27 = sshll.u32 %s474_s23, 4  ;;  %s2658_s0 = scalar_lea.sflag [#allocation3], %s470_s11  ;;  %s2650_s27 = int_to_ptr.vmem [resolvable:$true] %s481_s27 }
  0x67   : > { %p2314_p12 = pneg %p2654_p1 }
  0x69   : > { %s2648_s18 = scalar_lea.hbm %s3136_s1, %s1921_s24  ;;  %s2317_s21 = scalar_lea.hbm %s3136_s1, 1024 }
  0x6a   : > { %s2312_s7 = scalar_lea.hbm %s2648_s18, 512  ;;  %p2318_p5 = scmp.lt.s32.totalorder %s2648_s18, %s3136_s1 }
  0x6b   : > { %p2313_p7 = scmp.ne.s32.totalorder %s2648_s18, %s2312_s7  ;;  %p2319_p2 = scmp.lt.s32.totalorder %s2317_s21, %s2312_s7 }
  0x6d   : > { %p2315_p13 = pnand %p2314_p12, %p2313_p7  ;;  %p2320_p8 = por %p2319_p2, %p2318_p5 }
  0x6f   : > { %p2316_p0 = pneg %p2315_p13 }
  0x71   : > { %p2321_p9 = pnand %p2320_p8, %p2316_p0 }
  0x73   : > { %2324 = shalt.err (!%p2321_p9)
}
  0x74   : > { %s2325_s14 = scalar_lea.vmem %s2650_s27, 512  ;;  %s2430_s11 = smov [#allocation6]  }
  0x75   : > { %p2326_p11 = scmp.ne.s32.totalorder %s2650_s27, %s2325_s14  ;;  %s2330_s8 = sshll.u32 %s2430_s11, 4  ;;  %s2331_s8 = int_to_ptr.vmem [resolvable:$false] %s2330_s8 }
  0x76   : > { %s2332_s24 = scalar_lea.vmem %s2331_s8, 1024  ;;  %p2333_p13 = scmp.lt.s32.totalorder %s2650_s27, %s2331_s8 }
  0x77   : > { %p2328_p4 = pnand %p2326_p11, %p2314_p12  ;;  %p2334_p10 = scmp.lt.s32.totalorder %s2332_s24, %s2325_s14 }
  0x79   : > { %p2329_p7 = pneg %p2328_p4  ;;  %p2335_p6 = por %p2334_p10, %p2333_p13 }
  0x7b   : > { %p2336_p3 = pnand %p2335_p6, %p2329_p7 }
  0x7d   : > { %2339 = shalt.err (!%p2336_p3)
}
  0x7e   : > { %s3138_s7 = smov 4   ;;  %s3139_s13 = smov 64  }
  0x7f   : > { %2057 = dma.hbm_to_vmem [thread:$0]  (!%p2654_p1), %s2648_s18, 512, %s2650_s27, %s2658_s0, %s3139_s13, %s3139_s13, %s3138_s7  }
  0x80   : > { %p3140_p4 = scmp.ne.s32.totalorder %s3124_s20, 0 }
  0x81   : > { %p3141_p12 = scmp.eq.s32.totalorder (!%p3140_p4), %s2531_s19, 0 }
  0x82   : > { %507 = sbr.rel (%p3140_p4) target bundleno = 870 (0x366), region = 76 }
  0x87   : > { %2383 = dma.done.wait (%p3141_p12), [#allocation5], 16   ;;  %p3142_p0 = pmov %p3141_p12 }
  0x88   : > { %s2689_s8 = sand.u32 1, %s2412_s30   ;;  %p3143_p3 = scmp.ne.s32.totalorder %s3133_s10, 0 }
  0x89   : > { %2385 = vsyncadd (%p3142_p0), [#allocation5], 4294967280  ;;  %s1864_s28 = sshll.u32 %s2689_s8, 5  ;;  %s514_s21 = scalar_lea.sflag [#allocation3], %s2689_s8 }
  0x8a   : > { %s2693_s22 = scalar_lea.vmem [#allocation6], %s1864_s28 }
  0x8b   : > { %2387 = dma.done.wait (%p3143_p3), %s514_s21, 512  }
  0x8c   : > { %2389 = vsyncadd (%p3143_p3), %s514_s21, 4294966784  ;;  %p3144_p6 = pmov %p3142_p0 }
  0x8d   : > { %p3145_p10 = pmov %p3142_p0 }
  0x8e   : > { %2391 = dma.done.wait (%p3144_p6), [#allocation8], 32  }
  0x8f   : > { %2393 = vsyncadd (%p3145_p10), [#allocation8], 4294967264  ;;  %p3146_p1 = pmov %p3142_p0 }
  0x90   : > { %p3147_p5 = pmov %p3142_p0 }
  0x91   : > { %2395 = dma.done.wait (%p3146_p1), [#allocation11], 272  }
  0x92   : > { %2397 = vsyncadd (%p3147_p5), [#allocation11], 4294967024  ;;  %p3148_p2 = pmov %p3142_p0 }
  0x93   : > { %p3149_p8 = pmov %p3142_p0 }
  0x94   : > { %2399 = dma.done.wait (%p3148_p2), [#allocation14], 256  }
  0x95   : > { %2401 = vsyncadd (%p3149_p8), [#allocation14], 4294967040 }
  0x96   : > { %542 = sfence }
  0x97   : > { %v2119_v0 = vld [vmem:[%s3098_s6 + $0x8] sm:$0xff]   ;;  %v2120_v1 = vld [vmem:[%s3098_s6] sm:$0xff]   ;;  %vm654_vm0 = vcmask 261120   ;;  %vm848_vm1 = vcmask 1041409   ;;  %v2740_v11 = vld [vmem:[%s2693_s22 + $0x10] sm:$0xf]  ;;  %v929_v52 = vlaneseq }
  0x98   : > { %1952 = vmatprep.subr.bf16.mxu0 %v2119_v0  ;;  %v2718_v2 = vld [vmem:[%s2693_s22] sm:$0xf]  ;;  %v2721_v3 = vld [vmem:[%s2693_s22 + $0x4] sm:$0xf]  ;;  %v2724_v4 = vld [vmem:[%s2693_s22 + $0x8] sm:$0xf]  ;;  %v1896_v19 = vcombine.low %v2740_v11, %v2740_v11 }
  0x99   : > { %1953 = vmatpush3.bf16.msra.mxu0 %v2119_v0  ;;  %v1874_v5 = vcombine.low %v2718_v2, %v2721_v3  ;;  %v1892_v6 = vcombine.low %v2718_v2, %v2718_v2  ;;  %v1893_v7 = vcombine.low %v2721_v3, %v2721_v3  ;;  %v2733_v8 = vld [vmem:[%s2693_s22 + $0xc] sm:$0xf]  ;;  %v1894_v9 = vcombine.low %v2724_v4, %v2724_v4  ;;  %v2744_v15 = vld [vmem:[%s2693_s22 + $0x14] sm:$0xf]  ;;  %v2747_v16 = vld [vmem:[%s2693_s22 + $0x18] sm:$0xf] }
  0x9a   : > { %1954 = vmatprep.subr.bf16.mxu0 %v2120_v1  ;;  %v1895_v10 = vcombine.low %v2733_v8, %v2733_v8  ;;  %v1875_v17 = vcombine.low %v2724_v4, %v2733_v8  ;;  %v1897_v20 = vcombine.low %v2744_v15, %v2744_v15  ;;  %v2757_v21 = vld [vmem:[%s2693_s22 + $0x1c] sm:$0xf]  ;;  %vm851_vm2 = vcmask 1042434   ;;  %v2127_v24 = vld [vmem:[%s3096_s4 + $0x8] sm:$0xff]   ;;  %v2134_v39 = vld [vmem:[%s3096_s4] sm:$0xff]   ;;  %p592_p9 = scmp.lt.s32.totalorder %s2531_s19, 1 }
  0x9b   : > { %1956 = vmatprep.mubr.msk.bf16.mxu0 %vm654_vm0, %v1874_v5  ;;  %v839_v12 = vunpack.c.l.b16 %v1892_v6  ;;  %v840_v13 = vunpack.c.l.b16 %v1893_v7  ;;  %v841_v14 = vunpack.c.l.b16 %v1894_v9  ;;  %1968 = vmatprep.mubr.msk.bf16.mxu1 %vm654_vm0, %v1874_v5  ;;  %v1876_v25 = vcombine.low %v2740_v11, %v2744_v15  ;;  %v2135_v48 = vld [vmem:[#allocation10 + $0x8] sm:$0xff]   ;;  %v2136_v49 = vld [vmem:[#allocation10] sm:$0xff]   ;;  %v2138_v51 = vld [vmem:[#allocation13] sm:$0xff]   ;;  %s2793_s24 = sld [smem:[#allocation2]]  ;;  %p3154_p7 = scmp.ne.s32.totalorder %s3134_s25, 0 }
  0x9c   : > { %v842_v18 = vunpack.c.l.b16 %v1895_v10  ;;  %vm854_vm3 = vcmask 1043459   ;;  %v2431_v27 = vmov 0.0   ;;  %v843_v28 = vunpack.c.l.b16 %v1896_v19  ;;  %1964 = vmatprep.subr.bf16.mxu1 %v2135_v48  ;;  %v2137_v50 = vld [vmem:[#allocation13 + $0x8] sm:$0xff]   ;;  %s1913_s7 = sld [smem:[#allocation2 + $0x1]]  ;;  %s2434_s20 = smov [#allocation15]  }
  0x9d   : > { %1955 = vmatpush3.bf16.msra.mxu0 %v2120_v1  ;;  %v847_v22 = vrot.slane %v840_v13, 7  ;;  %v850_v23 = vrot.slane %v841_v14, 6  ;;  %v844_v29 = vunpack.c.l.b16 %v1897_v20  ;;  %vm857_vm4 = vcmask 1044484   ;;  %1965 = vmatpush3.bf16.msra.mxu1 %v2135_v48  ;;  %s593_s13 = scalar_select %p592_p9, %s2531_s19, 1 }
  0x9e   : > { %v853_v26 = vrot.slane %v842_v18, 5  ;;  %1976 = vmatprep.subr.bf16.mxu0 %v2431_v27  ;;  %v1898_v31 = vcombine.low %v2747_v16, %v2747_v16  ;;  %v1899_v32 = vcombine.low %v2757_v21, %v2757_v21  ;;  %v856_v34 = vrot.slane %v843_v28, 4  ;;  %1966 = vmatprep.subr.bf16.mxu1 %v2136_v49  ;;  %s3150_s11 = sld [smem:[#allocation27_spill]]  ;;  %s2344_s27 = sshll.u32 %s2434_s20, 4  ;;  %s2345_s27 = int_to_ptr.vmem [resolvable:$false] %s2344_s27 }
  0x9f   : > { %v849_v30 = vsel %vm848_vm1, %v847_v22, %v839_v12  ;;  %v859_v35 = vrot.slane %v844_v29, 3  ;;  %vm860_vm5 = vcmask 1045509   ;;  %vm863_vm6 = vcmask 1046534   ;;  %s1871_s28 = sshll.u32 %s593_s13, 3  ;;  %s3152_s13 = sld [smem:[#allocation29_spill]] }
  0xa0   : > { %1957 = vmatmul.mubr.msk.bf16.vlgmr.msra.gmra.mxu0 %vm654_vm0, %v1875_v17  ;;  %v852_v33 = vsel %vm851_vm2, %v850_v23, %v849_v30  ;;  %v845_v37 = vunpack.c.l.b16 %v1898_v31  ;;  %v846_v38 = vunpack.c.l.b16 %v1899_v32  ;;  %v1877_v43 = vcombine.low %v2747_v16, %v2757_v21  ;;  %s599_s0 = scalar_lea.vmem %s3095_s3, %s1871_s28  ;;  %s595_s10 = scalar_lea.vmem %s3094_s2, %s1871_s28 }
  0xa1   : > { %v855_v36 = vsel %vm854_vm3, %v853_v26, %v852_v33  ;;  %1977 = vmatpush3.bf16.msra.mxu0 %v2127_v24  ;;  %1960 = vmatprep.mubr.msk.bf16.mxu0 %vm654_vm0, %v1876_v25  ;;  %vm866_vm7 = vcmask 1047559   ;;  %vm2432_vm8 = vmmov 0   ;;  %v2795_v53 = vshrl.u32 %v929_v52, 7  ;;  %v610_v58 = vld [vmem:[%s599_s0] sm:$0xff]  ;;  %s1427_s18 = smul.f32 0.125, %s2793_s24  ;;  %s1870_s0 = sshll.u32 %s2689_s8, 3 }
  0xa2   : > { %v858_v40 = vsel %vm857_vm4, %v856_v34, %v855_v36  ;;  %1978 = vmatprep.subr.bf16.mxu0 %v2431_v27  ;;  %v862_v42 = vrot.slane %v845_v37, 2  ;;  %v865_v44 = vrot.slane %v846_v38, 1  ;;  %1967 = vmatpush3.bf16.msra.mxu1 %v2136_v49  ;;  %vm1425_vm9 = vcmp.lt.f32.partialorder %v610_v58, 0.0  ;;  %v2811_v60 = vld [vmem:[%s595_s10] sm:$0xff]  ;;  %s3151_s10 = sld [smem:[#allocation28_spill]]  ;;  %s590_s23 = scalar_lea.vmem [#allocation15], %s1870_s0 }
  0xa3   : > { %v861_v41 = vsel %vm860_vm5, %v859_v35, %v858_v40  ;;  %1984 = vmatprep.subr.bf16.mxu1 %v2137_v50  ;;  %v1159_v54 = vsub.s32 2, %v2795_v53  ;;  %v2800_v55 = vsub.s32 0, %v2795_v53  ;;  %v1152_v56 = vsub.s32 1, %v2795_v53  ;;  %v1873_v49 = vld [vmem:[#allocation9] ss:$0 sm:$0xff]  ;;  %s1696_s14 = sshll.u32 %s590_s23, 4  ;;  %s1697_s14 = int_to_ptr.vmem [resolvable:$true] %s1696_s14 }
  0xa4   : > { %v864_v45 = vsel %vm863_vm6, %v862_v42, %v861_v41  ;;  %v1166_v57 = vsub.s32 3, %v2795_v53  ;;  %v1173_v0 = vsub.s32 4, %v2795_v53  ;;  %v1180_v1 = vsub.s32 5, %v2795_v53  ;;  %v1891_v41 = vld [vmem:[#allocation7] ss:$0 sm:$0xff]  ;;  %s3153_s22 = sld [smem:[#allocation30_spill]]  ;;  %p2347_p12 = scmp.lt.s32.totalorder %s1697_s14, %s2345_s27 }
  0xa5   : > { %1979 = vmatpush3.bf16.msra.mxu0 %v2134_v39  ;;  %v867_v46 = vsel %vm866_vm7, %v865_v44, %v864_v45  ;;  %1969 = vmatmul.mubr.msk.bf16.vlgmr.msra.gmra.mxu1 %vm654_vm0, %v1875_v17  ;;  %v1146_v59 = vrot.slane %v610_v58, %v2800_v55  ;;  %v1160_v61 = vrot.slane %v610_v58, %v1159_v54  ;;  %v1428_v5 = vstv %s1913_s7  ;;  %s2340_s0 = scalar_lea.vmem %s1697_s14, 128 }
  0xa6   : > { %1996 = vmatprep.subr.mxu0 %v2431_v27  ;;  %v868_v47 = vpack.c.b16 %v867_v46, %v867_v46  ;;  %1972 = vmatprep.mubr.msk.bf16.mxu1 %vm654_vm0, %v1876_v25  ;;  %v1153_v62 = vrot.slane %v610_v58, %v1152_v56  ;;  %v1167_v63 = vrot.slane %v610_v58, %v1166_v57  ;;  %v1426_v6 = vsel %vm1425_vm9, 0.0, %v2811_v60  ;;  %p2341_p11 = scmp.ne.s32.totalorder %s1697_s14, %s2340_s0 }
  0xa7   : > { %1985 = vmatpush3.bf16.msra.mxu1 %v2137_v50  ;;  %1148 = vbcast.lane.b32.xlu0 %v1146_v59, 256  ;;  %v1187_v7 = vsub.s32 6, %v2795_v53  ;;  %v1429_v9 = vmul.f32 %v1428_v5, %v1426_v6  ;;  %v1174_v10 = vrot.slane %v610_v58, %v1173_v0  ;;  %v1181_v12 = vrot.slane %v610_v58, %v1180_v1 }
  0xa8   : > { %1961 = vmatmul.mubr.msk.bf16.gmra.mxu0 %vm654_vm0, %v1877_v43  ;;  %1986 = vmatprep.subr.bf16.mxu1 %v2138_v51  ;;  %v1194_v13 = vsub.s32 7, %v2795_v53  ;;  %v1430_v14 = vstv %s1427_s18  ;;  %v2433_v34 = vmov 1966171168   ;;  %vm1666_vm10 = vcmask 64512   ;;  %s1918_s18 = sshll.u32 %s2531_s19, 7  ;;  %s1683_s19 = scalar_lea.sflag [#allocation4], %s2689_s8 }
  0xa9   : > { %1980 = vmatprep.mubr.msk.bf16.mxu0 %vm2432_vm8, %v2431_v27  ;;  %1162 = vbcast.lane.b32.xlu1 %v1160_v61, 256  ;;  %v1431_v17 = vadd.f32 %v1430_v14, %v1429_v9  ;;  %v1188_v18 = vrot.slane %v610_v58, %v1187_v7  ;;  %v927_v35 = vunpack.c.l.s4 %v2433_v34  ;;  %p2342_p13 = pnand %p2341_p11, %p3154_p7 }
  0xaa   : > { %v1195_v19 = vrot.slane %v610_v58, %v1194_v13  ;;  %s3054_s1 = scalar_lea.hbm %s3153_s22, %s1918_s18 }
  0xab   : > { %1987 = vmatpush3.bf16.msra.mxu1 %v2138_v51  ;;  %1155 = vbcast.lane.b32.xlu0 %v1153_v62, 256  ;;  %v1435_v20 = vrot.slane %v1431_v17, %v2800_v55  ;;  %v1442_v22 = vrot.slane %v1431_v17, %v1152_v56  ;;  %v1449_v23 = vrot.slane %v1431_v17, %v1159_v54  ;;  %v928_v38 = vunpack.c.0.s8 %v927_v35  ;;  %p2343_p4 = pneg %p2342_p13 }
  0xac   : > { %v1456_v24 = vrot.slane %v1431_v17, %v1166_v57  ;;  %v1463_v25 = vrot.slane %v1431_v17, %v1173_v0  ;;  %v1470_v26 = vrot.slane %v1431_v17, %v1180_v1  ;;  %v1477_v28 = vrot.slane %v1431_v17, %v1187_v7 }
  0xad   : > { %1973 = vmatmul.mubr.msk.bf16.gmra.mxu1 %vm654_vm0, %v1877_v43  ;;  %1169 = vbcast.lane.b32.xlu1 %v1167_v63, 256  ;;  %v1484_v29 = vrot.slane %v1431_v17, %v1194_v13  ;;  %v931_v42 = vsub.s32 %v928_v38, %v2795_v53  ;;  %v1571_v38 = vld [vmem:[%s3150_s11 + $0x18] sm:$0xff] }
  0xaf   : > { %1176 = vbcast.lane.b32.xlu0 %v1174_v10, 256 }
  0xb0   : > { %1981 = vmatmul.mubr.msk.bf16.vlgmr.msra.gmra.mxu0 %vm654_vm0, %v868_v47 }
  0xb1   : > { %2004 = vmatprep.mubr.msk.f32.mxu0 %vm2432_vm8, %v2431_v27  ;;  %1183 = vbcast.lane.b32.xlu1 %v1181_v12, 256 }
  0xb2   : > { %1997 = vmatpush3.msra.mxu0 %v1571_v38 }
  0xb3   : > { %1190 = vbcast.lane.b32.xlu0 %v1188_v18, 256  ;;  %1998 = vmatprep.subr.mxu0 %v2431_v27 }
  0xb5   : > { %1197 = vbcast.lane.b32.xlu1 %v1195_v19, 256 }
  0xb7   : > { %1437 = vbcast.lane.b32.xlu0 %v1435_v20, 256 }
  0xb9   : > { %1444 = vbcast.lane.b32.xlu1 %v1442_v22, 256 }
  0xbb   : > { %1451 = vbcast.lane.b32.xlu0 %v1449_v23, 256 }
  0xbd   : > { %1458 = vbcast.lane.b32.xlu1 %v1456_v24, 256 }
  0xbf   : > { %1465 = vbcast.lane.b32.xlu0 %v1463_v25, 256 }
  0xc1   : > { %1472 = vbcast.lane.b32.xlu1 %v1470_v26, 256 }
  0xc3   : > { %1479 = vbcast.lane.b32.xlu0 %v1477_v28, 256 }
  0xc5   : > { %1486 = vbcast.lane.b32.xlu1 %v1484_v29, 256 }
 0x160   : > { %v1958_v30 = vpop.f32.mrf.mxu0 }
 0x161   : > { %v710_v61 = vadd.f32 %v1958_v30, %v1873_v49 }
 0x162   : > { %v701_v31 = vpop.f32.mrf.mxu0 }
 0x163   : > { %v702_v62 = vadd.f32 %v1873_v49, %v701_v31 }
 0x164   : > { %v1959_v32 = vpop.f32.mrf.mxu0 }
 0x165   : > { %v713_v53 = vadd.f32 %v1959_v32, %v1873_v49 }
 0x166   : > { %v704_v33 = vpop.f32.mrf.mxu0 }
 0x167   : > { %v705_v6 = vadd.f32 %v1873_v49, %v704_v33 }
 0x168   : > { %v1962_v36 = vpop.f32.mrf.mxu0 }
 0x169   : > { %v726_v33 = vadd.f32 %v1962_v36, %v1873_v49  ;;  %v1568_v36 = vld [vmem:[%s3150_s11] sm:$0xff] }
 0x16a   : > { %v717_v37 = vpop.f32.mrf.mxu0 }
 0x16b   : > { %v718_v7 = vadd.f32 %v1873_v49, %v717_v37 }
 0x16c   : > { %v1963_v39 = vpop.f32.mrf.mxu0 }
 0x16d   : > { %v729_v31 = vadd.f32 %v1963_v39, %v1873_v49  ;;  %v1570_v39 = vld [vmem:[%s3150_s11 + $0x10] sm:$0xff] }
 0x16e   : > { %v720_v40 = vpop.f32.mrf.mxu0  ;;  %1999 = vmatpush3.msra.mxu0 %v1570_v39 }
 0x16f   : > { %v721_v12 = vadd.f32 %v1873_v49, %v720_v40  ;;  %2000 = vmatprep.subr.mxu0 %v2431_v27  ;;  %v1667_v40 = vsel %vm1666_vm10, %v2811_v60, 0.0 }
 0x170   : > { %v918_v43 = vpop.f32.mrf.mxu0  ;;  %1668 = vadd.xlane.f32.xlu0 %v1667_v40 }
 0x171   : > { %v919_v44 = vadd.f32 %v1891_v41, %v918_v43  ;;  %v1149_v41 = vpop.permute.xlu0 %1148 }
 0x172   : > { %v1982_v45 = vpop.f32.mrf.mxu0 }
 0x173   : > { %v925_v46 = vcombine.high %v919_v44, %v919_v44  ;;  %v932_v47 = vrot.slane %v919_v44, %v931_v42  ;;  %v1970_v45 = vpop.f32.mrf.mxu1 }
 0x174   : > { %v921_v48 = vpop.f32.mrf.mxu0 }
 0x175   : > { %v939_v50 = vrot.slane %v925_v46, %v931_v42  ;;  %v940_v51 = vcombine.high %v932_v47, %v932_v47  ;;  %v948_v52 = vrot.slane %v932_v47, %v931_v42  ;;  %v1156_v43 = vpop.permute.xlu0 %1155  ;;  %v789_v46 = vpop.f32.mrf.mxu1 }
 0x176   : > { %v1983_v54 = vpop.f32.mrf.mxu0 }
 0x177   : > { %v941_v56 = vcombine.high %v939_v50, %v939_v50  ;;  %v955_v57 = vrot.slane %v939_v50, %v931_v42  ;;  %v962_v58 = vrot.slane %v940_v51, %v931_v42  ;;  %v970_v59 = vcombine.high %v948_v52, %v948_v52  ;;  %v1971_v49 = vpop.f32.mrf.mxu1 }
 0x178   : > { %v977_v63 = vrot.slane %v948_v52, %v2800_v55  ;;  %v1489_v54 = vunpack.c.l.bf16 %v2721_v3 }
 0x179   : > { %v969_v0 = vrot.slane %v941_v56, %v931_v42  ;;  %v972_v1 = vcombine.high %v962_v58, %v962_v58  ;;  %v981_v5 = vrot.slane %v962_v58, %v2800_v55  ;;  %v985_v9 = vrot.slane %v970_v59, %v2800_v55  ;;  %v1163_v42 = vpop.permute.xlu1 %1162  ;;  %v2849_v47 = vpop.permute.xlu0 %1176 }
 0x17a   : > { %v993_v10 = vrot.slane %v955_v57, %v2800_v55  ;;  %v971_v18 = vcombine.high %v955_v57, %v955_v57  ;;  %v1014_v19 = vmul.f32 %v977_v63, %v702_v62  ;;  %v792_v52 = vpop.f32.mrf.mxu1  ;;  %v1490_v62 = vunpack.c.l.bf16 %v2724_v4 }
 0x17b   : > { %v973_v13 = vcombine.high %v969_v0, %v969_v0  ;;  %v989_v14 = vrot.slane %v972_v1, %v2800_v55  ;;  %v997_v17 = vrot.slane %v969_v0, %v2800_v55  ;;  %v1015_v20 = vmul.f32 %v981_v5, %v705_v6 }
 0x17c   : > { %v1016_v22 = vmul.f32 %v985_v9, %v710_v61  ;;  %v1018_v24 = vmul.f32 %v993_v10, %v718_v7  ;;  %v1001_v32 = vrot.slane %v971_v18, %v2800_v55  ;;  %v1974_v57 = vpop.f32.mrf.mxu1  ;;  %v1491_v4 = vunpack.c.l.bf16 %v2733_v8 }
 0x17d   : > { %v1017_v23 = vmul.f32 %v989_v14, %v713_v53  ;;  %v1019_v25 = vmul.f32 %v997_v17, %v721_v12  ;;  %v1922_v26 = vpack.c.bf16 %v1015_v20, %v1014_v19  ;;  %v1005_v30 = vrot.slane %v973_v13, %v2800_v55  ;;  %v1569_v55 = vld [vmem:[%s3150_s11 + $0x8] sm:$0xff]  ;;  %v1170_v44 = vpop.permute.xlu1 %1169  ;;  %v1191_v50 = vpop.permute.xlu0 %1190  ;;  %v2867_v12 = vld [vmem:[#allocation12] ss:$0 sm:$0xff] }
 0x17e   : > { %v1020_v35 = vmul.f32 %v1001_v32, %v726_v33  ;;  %2001 = vmatpush3.msra.mxu0 %v1569_v55  ;;  %v2857_v61 = vpop.f32.mrf.mxu1  ;;  %v2883_v8 = vadd.f32 %v1971_v49, %v2867_v12 }
 0x17f   : > { %v1923_v28 = vpack.c.bf16 %v1017_v23, %v1016_v22  ;;  %v1924_v29 = vpack.c.bf16 %v1019_v25, %v1018_v24  ;;  %1988 = vmatprep.mubr.msk.bf16.mxu1 %vm654_vm0, %v1922_v26  ;;  %v1021_v34 = vmul.f32 %v1005_v30, %v729_v31  ;;  %2002 = vmatprep.subr.mxu0 %v2431_v27  ;;  %v1488_v27 = vunpack.c.l.bf16 %v2718_v2 }
 0x180   : > { %2003 = vmatpush3.msra.mxu0 %v1568_v36  ;;  %v2862_v1 = vpop.f32.mrf.mxu1  ;;  %v2873_v22 = vadd.f32 %v1970_v45, %v2867_v12  ;;  %v2880_v26 = vadd.f32 %v2867_v12, %v789_v46  ;;  %v2886_v31 = vadd.f32 %v2867_v12, %v792_v52 }
 0x181   : > { %1989 = vmatmul.mubr.msk.bf16.vlgmr.msra.gmra.mxu1 %vm654_vm0, %v1923_v28  ;;  %v1925_v37 = vpack.c.bf16 %v1021_v34, %v1020_v35  ;;  %v2851_v48 = vpop.permute.xlu1 %1183  ;;  %v1438_v60 = vpop.permute.xlu0 %1437  ;;  %v2895_v35 = vadd.f32 %v1974_v57, %v2867_v12 }
 0x182   : > { %1992 = vmatprep.mubr.msk.bf16.mxu1 %vm654_vm0, %v1924_v29  ;;  %v1496_v58 = vmul.f32 %v1488_v27, %v1438_v60  ;;  %v2864_v7 = vpop.f32.mrf.mxu1 }
 0x184   : > { %v1504_v63 = vsel %vm654_vm0, %v1496_v58, 0.0 }
 0x185   : > { %v2853_v51 = vpop.permute.xlu1 %1197  ;;  %v1452_v53 = vpop.permute.xlu0 %1451  ;;  %v1505_v5 = vrot.slane %v1504_v63, 4 }
 0x186   : > { %v1498_v2 = vmul.f32 %v1490_v62, %v1452_v53 }
 0x187   : > { %v1506_v3 = vadd.f32 %v1505_v5, %v1504_v63 }
 0x188   : > { %v1518_v9 = vsel %vm654_vm0, %v1498_v2, 0.0 }
 0x189   : > { %1993 = vmatmul.mubr.msk.bf16.gmra.mxu1 %vm654_vm0, %v1925_v37  ;;  %v1445_v56 = vpop.permute.xlu1 %1444  ;;  %v1519_v17 = vrot.slane %v1518_v9, 4  ;;  %v1507_v20 = vrot.slane %v1506_v3, 2  ;;  %v1466_v27 = vpop.permute.xlu0 %1465 }
 0x18a   : > { %v1497_v59 = vmul.f32 %v1489_v54, %v1445_v56  ;;  %v1493_v56 = vunpack.c.l.bf16 %v2744_v15 }
 0x18b   : > { %v2892_v34 = vadd.f32 %v1519_v17, %v1518_v9  ;;  %v2897_v55 = vadd.f32 %v1507_v20, %v1506_v3 }
 0x18c   : > { %v1511_v0 = vsel %vm654_vm0, %v1497_v59, 0.0 }
 0x18d   : > { %v1512_v6 = vrot.slane %v1511_v0, 4  ;;  %v1459_v18 = vpop.permute.xlu1 %1458 }
 0x18e   : > { %v1499_v30 = vmul.f32 %v1491_v4, %v1459_v18 }
 0x18f   : > { %v1513_v10 = vadd.f32 %v1512_v6, %v1511_v0 }
 0x190   : > { %v2907_v52 = vsel %vm654_vm0, %v1499_v30, 0.0 }
 0x191   : > { %v1514_v25 = vrot.slane %v1513_v10, 2  ;;  %v1473_v63 = vpop.permute.xlu1 %1472  ;;  %v1526_v5 = vrot.slane %v2907_v52, 4 }
 0x192   : > { %v1501_v17 = vmul.f32 %v1493_v56, %v1473_v63 }
 0x241   : > { %v1990_v13 = vpop.f32.mrf.mxu1 }
 0x242   : > { %v2870_v14 = vadd.f32 %v1990_v13, %v1163_v42  ;;  %v1492_v42 = vunpack.c.l.bf16 %v2740_v11 }
 0x243   : > { %v1112_v19 = vpop.f32.mrf.mxu1 }
 0x244   : > { %v1221_v23 = vsel %vm654_vm0, %v2870_v14, -inf  ;;  %v2877_v24 = vadd.f32 %v1149_v41, %v1112_v19  ;;  %v2903_v41 = vadd.f32 %v1514_v25, %v1513_v10 }
 0x245   : > { %v1222_v28 = vrot.slane %v1221_v23, 4  ;;  %v1991_v29 = vpop.f32.mrf.mxu1 }
 0x246   : > { %v1207_v32 = vsel %vm654_vm0, %v2877_v24, -inf  ;;  %v2890_v33 = vadd.f32 %v1991_v29, %v1170_v44 }
 0x247   : > { %v1223_v37 = vmax.f32 %v1221_v23, %v1222_v28  ;;  %v1208_v38 = vrot.slane %v1207_v32, 4  ;;  %v1115_v39 = vpop.f32.mrf.mxu1 }
 0x248   : > { %v1228_v36 = vsel %vm654_vm0, %v2890_v33, -inf  ;;  %v2901_v40 = vadd.f32 %v1156_v43, %v1115_v39  ;;  %v1521_v43 = vrot.slane %v2892_v34, 2 }
 0x249   : > { %v1224_v44 = vrot.slane %v1223_v37, 2  ;;  %v1209_v45 = vmax.f32 %v1207_v32, %v1208_v38  ;;  %v1229_v46 = vrot.slane %v1228_v36, 4  ;;  %v1994_v49 = vpop.f32.mrf.mxu1 }
 0x24a   : > { %v1214_v60 = vsel %vm654_vm0, %v2901_v40, -inf  ;;  %v2911_v54 = vadd.f32 %v1994_v49, %v1191_v50  ;;  %v1500_v50 = vmul.f32 %v1492_v42, %v1466_v27 }
 0x24b   : > { %v1225_v57 = vmax.f32 %v1223_v37, %v1224_v44  ;;  %v1210_v58 = vrot.slane %v1209_v45, 2  ;;  %v1230_v11 = vmax.f32 %v1228_v36, %v1229_v46  ;;  %v1215_v59 = vrot.slane %v1214_v60, 4  ;;  %v1128_v62 = vpop.f32.mrf.mxu1 }
 0x24c   : > { %v1249_v53 = vsel %vm654_vm0, %v2911_v54, -inf  ;;  %v2918_v0 = vadd.f32 %v2849_v47, %v1128_v62 }
 0x24d   : > { %v1226_v2 = vrot.slane %v1225_v57, 1  ;;  %v1211_v6 = vmax.f32 %v1209_v45, %v1210_v58  ;;  %v1231_v3 = vrot.slane %v1230_v11, 2  ;;  %v1216_v9 = vmax.f32 %v1214_v60, %v1215_v59  ;;  %v1995_v15 = vpop.f32.mrf.mxu1 }
 0x24e   : > { %v1250_v10 = vrot.slane %v1249_v53, 4  ;;  %v1235_v13 = vsel %vm654_vm0, %v2918_v0, -inf  ;;  %v2924_v4 = vadd.f32 %v1995_v15, %v2853_v51 }
 0x24f   : > { %v1227_v18 = vmax.f32 %v1225_v57, %v1226_v2  ;;  %v1212_v19 = vrot.slane %v1211_v6, 1  ;;  %v1232_v47 = vmax.f32 %v1230_v11, %v1231_v3  ;;  %v1217_v20 = vrot.slane %v1216_v9, 2  ;;  %v1131_v23 = vpop.f32.mrf.mxu1 }
 0x250   : > { %v1251_v25 = vmax.f32 %v1249_v53, %v1250_v10  ;;  %v1236_v28 = vrot.slane %v1235_v13, 4  ;;  %v1256_v29 = vsel %vm654_vm0, %v2924_v4, -inf  ;;  %v2929_v30 = vadd.f32 %v2851_v48, %v1131_v23 }
 0x251   : > { %v1265_v32 = vsub.f32 %v2870_v14, %v1227_v18  ;;  %v1213_v37 = vmax.f32 %v1211_v6, %v1212_v19  ;;  %v1233_v38 = vrot.slane %v1232_v47, 1  ;;  %v1218_v51 = vmax.f32 %v1216_v9, %v1217_v20 }
 0x252   : > { %v1252_v39 = vrot.slane %v1251_v25, 2  ;;  %v1237_v36 = vmax.f32 %v1235_v13, %v1236_v28  ;;  %v1257_v42 = vrot.slane %v1256_v29, 4  ;;  %v1242_v44 = vsel %vm654_vm0, %v2929_v30, -inf }
 0x253   : > { %v1275_v45 = vmul.f32 1.442695, %v1265_v32  ;;  %v1263_v46 = vsub.f32 %v2877_v24, %v1213_v37  ;;  %v1234_v49 = vmax.f32 %v1232_v47, %v1233_v38  ;;  %v1219_v27 = vrot.slane %v1218_v51, 1  ;;  %v1480_v38 = vpop.permute.xlu0 %1479 }
 0x254   : > { %v1253_v60 = vmax.f32 %v1251_v25, %v1252_v39  ;;  %v1238_v56 = vrot.slane %v1237_v36, 2  ;;  %v1258_v48 = vmax.f32 %v1256_v29, %v1257_v42  ;;  %v1243_v57 = vrot.slane %v1242_v44, 4 }
 0x255   : > { %2139 = vpow2.f32 %v1275_v45  ;;  %v1271_v14 = vmul.f32 1.442695, %v1263_v46  ;;  %v1266_v58 = vsub.f32 %v2890_v33, %v1234_v49  ;;  %v1220_v11 = vmax.f32 %v1218_v51, %v1219_v27  ;;  %v1487_v46 = vpop.permute.xlu1 %1486 }
 0x256   : > { %v1254_v59 = vrot.slane %v1253_v60, 1  ;;  %v1239_v62 = vmax.f32 %v1237_v36, %v1238_v56  ;;  %v1259_v63 = vrot.slane %v1258_v48, 2  ;;  %v1244_v53 = vmax.f32 %v1242_v44, %v1243_v57 }
 0x257   : > { %2141 = vpow2.f32 %v1271_v14  ;;  %v1277_v2 = vmul.f32 1.442695, %v1266_v58  ;;  %v1264_v6 = vsub.f32 %v2901_v40, %v1220_v11  ;;  %v1532_v24 = vsel %vm654_vm0, %v1500_v50, 0.0 }
 0x258   : > { %v1255_v3 = vmax.f32 %v1253_v60, %v1254_v59  ;;  %v1240_v9 = vrot.slane %v1239_v62, 1  ;;  %v1260_v15 = vmax.f32 %v1258_v48, %v1259_v63  ;;  %v1245_v10 = vrot.slane %v1244_v53, 2 }
 0x259   : > { %2143 = vpow2.f32 %v1277_v2  ;;  %v1273_v13 = vmul.f32 1.442695, %v1264_v6  ;;  %v1522_v33 = vadd.f32 %v1521_v43, %v2892_v34  ;;  %v1527_v18 = vadd.f32 %v1526_v5, %v2907_v52 }
 0x25a   : > { %v1269_v19 = vsub.f32 %v2911_v54, %v1255_v3  ;;  %v1241_v47 = vmax.f32 %v1239_v62, %v1240_v9  ;;  %v1261_v20 = vrot.slane %v1260_v15, 1  ;;  %v1246_v23 = vmax.f32 %v1244_v53, %v1245_v10 }
 0x25b   : > { %2145 = vpow2.f32 %v1273_v13  ;;  %v1533_v40 = vrot.slane %v1532_v24, 4  ;;  %v1539_v50 = vsel %vm654_vm0, %v1501_v17, 0.0  ;;  %v1494_v25 = vunpack.c.l.bf16 %v2747_v16 }
 0x25c   : > { %v1283_v28 = vmul.f32 1.442695, %v1269_v19  ;;  %v1267_v29 = vsub.f32 %v2918_v0, %v1241_v47  ;;  %v1262_v32 = vmax.f32 %v1260_v15, %v1261_v20  ;;  %v1247_v37 = vrot.slane %v1246_v23, 1 }
 0x25d   : > { %v1509_v34 = vrot.slane %v2897_v55, 1  ;;  %v1516_v52 = vrot.slane %v2903_v41, 1  ;;  %v1523_v54 = vrot.slane %v1522_v33, 1  ;;  %v1528_v43 = vrot.slane %v1527_v18, 2 }
 0x25e   : > { %2147 = vpow2.f32 %v1283_v28  ;;  %v1279_v5 = vmul.f32 1.442695, %v1267_v29  ;;  %v1270_v51 = vsub.f32 %v2924_v4, %v1262_v32  ;;  %v1248_v39 = vmax.f32 %v1246_v23, %v1247_v37 }
 0x25f   : > { %v2951_v16 = vadd.f32 %v2867_v12, %v2857_v61  ;;  %v1540_v17 = vrot.slane %v1539_v50, 4  ;;  %v1502_v0 = vmul.f32 %v1494_v25, %v1480_v38  ;;  %v1495_v36 = vunpack.c.l.bf16 %v2757_v21 }
 0x260   : > { %2149 = vpow2.f32 %v1279_v5  ;;  %v1285_v42 = vmul.f32 1.442695, %v1270_v51  ;;  %v1268_v44 = vsub.f32 %v2929_v30, %v1248_v39  ;;  %v2955_v45 = vadd.f32 %v1533_v40, %v1532_v24 }
 0x261   : > { %v2959_v49 = vadd.f32 %v2862_v1, %v2867_v12  ;;  %v2963_v4 = vadd.f32 %v2867_v12, %v2864_v7  ;;  %v2966_v61 = vadd.f32 %v1509_v34, %v2897_v55  ;;  %v2968_v27 = vadd.f32 %v1528_v43, %v1527_v18 }
 0x262   : > { %v2140_v21 = vpop.eup %2139  ;;  %2151 = vpow2.f32 %v1285_v42  ;;  %v1281_v60 = vmul.f32 1.442695, %v1268_v44  ;;  %v2971_v30 = vadd.f32 %v1516_v52, %v2903_v41  ;;  %v2973_v56 = vadd.f32 %v1523_v54, %v1522_v33 }
 0x263   : > { %v1301_v1 = vsel %vm654_vm0, %v2140_v21, 0.0  ;;  %v1345_v48 = vmul.f32 %v2140_v21, %v2873_v22  ;;  %v1546_v7 = vsel %vm654_vm0, %v1502_v0, 0.0  ;;  %v1503_v12 = vmul.f32 %v1495_v36, %v1487_v46 }
 0x264   : > { %v2142_v57 = vpop.eup %2141  ;;  %v1302_v55 = vrot.slane %v1301_v1, 4  ;;  %2153 = vpow2.f32 %v1281_v60  ;;  %v1535_v14 = vrot.slane %v2955_v45, 2  ;;  %v2979_v58 = vadd.f32 %v1540_v17, %v1539_v50 }
 0x265   : > { %v1287_v11 = vsel %vm654_vm0, %v2142_v57, 0.0  ;;  %v1343_v41 = vmul.f32 %v2142_v57, %v2880_v26  ;;  %v1365_v59 = vsel %vm654_vm0, %v1345_v48, 0.0  ;;  %v1530_v62 = vrot.slane %v2968_v27, 1 }
 0x266   : > { %v2144_v63 = vpop.eup %2143  ;;  %v1303_v22 = vadd.f32 %v1302_v55, %v1301_v1  ;;  %v1288_v53 = vrot.slane %v1287_v11, 4  ;;  %v1366_v2 = vrot.slane %v1365_v59, 4  ;;  %v1547_v6 = vrot.slane %v1546_v7, 4 }
 0x267   : > { %v1308_v24 = vsel %vm654_vm0, %v2144_v63, 0.0  ;;  %v1346_v3 = vmul.f32 %v2144_v63, %v2883_v8  ;;  %v1351_v9 = vsel %vm654_vm0, %v1343_v41, 0.0  ;;  %v2989_v15 = vsel %vm654_vm0, %v1503_v12, 0.0 }
 0x268   : > { %v2146_v10 = vpop.eup %2145  ;;  %v1304_v26 = vrot.slane %v1303_v22, 2  ;;  %v1289_v13 = vadd.f32 %v1288_v53, %v1287_v11  ;;  %v1309_v33 = vrot.slane %v1308_v24, 4  ;;  %v1352_v18 = vrot.slane %v1351_v9, 4 }
 0x269   : > { %v1294_v19 = vsel %vm654_vm0, %v2146_v10, 0.0  ;;  %v1344_v47 = vmul.f32 %v2146_v10, %v2886_v31  ;;  %v1367_v20 = vadd.f32 %v1366_v2, %v1365_v59  ;;  %v2994_v23 = vsel %vm654_vm0, %v1346_v3, 0.0 }
 0x26a   : > { %v1305_v40 = vadd.f32 %v1304_v26, %v1303_v22  ;;  %v1290_v8 = vrot.slane %v1289_v13, 2  ;;  %v1310_v50 = vadd.f32 %v1309_v33, %v1308_v24  ;;  %v1295_v25 = vrot.slane %v1294_v19, 4 }
 0x26b   : > { %v2148_v28 = vpop.eup %2147  ;;  %v1353_v29 = vadd.f32 %v1352_v18, %v1351_v9  ;;  %v1542_v32 = vrot.slane %v2979_v58, 2  ;;  %v2997_v37 = vadd.f32 %v1547_v6, %v1546_v7  ;;  %v1554_v38 = vrot.slane %v2989_v15, 4 }
 0x26c   : > { %v1306_v34 = vrot.slane %v1305_v40, 1  ;;  %v1291_v52 = vadd.f32 %v1290_v8, %v1289_v13  ;;  %v1311_v54 = vrot.slane %v1310_v50, 2  ;;  %v1296_v31 = vadd.f32 %v1295_v25, %v1294_v19 }
 0x26d   : > { %v2150_v43 = vpop.eup %2149  ;;  %v1329_v5 = vsel %vm654_vm0, %v2148_v28, 0.0  ;;  %v1358_v51 = vsel %vm654_vm0, %v1344_v47, 0.0  ;;  %v1368_v39 = vrot.slane %v1367_v20, 2  ;;  %v1373_v17 = vrot.slane %v2994_v23, 4 }
 0x26e   : > { %v1292_v0 = vrot.slane %v1291_v52, 1  ;;  %v1312_v36 = vadd.f32 %v1311_v54, %v1310_v50  ;;  %v1297_v42 = vrot.slane %v1296_v31, 2  ;;  %v3004_v44 = vmul.f32 %v2148_v28, %v2895_v35 }
 0x26f   : > { %v2152_v46 = vpop.eup %2151  ;;  %v1307_v21 = vadd.f32 %v1306_v34, %v1305_v40  ;;  %v1330_v60 = vrot.slane %v1329_v5, 4  ;;  %v1315_v1 = vsel %vm654_vm0, %v2150_v43, 0.0  ;;  %v1354_v48 = vrot.slane %v1353_v29, 2 }
 0x270   : > { %v1293_v7 = vadd.f32 %v1292_v0, %v1291_v52  ;;  %v1313_v12 = vrot.slane %v1312_v36, 1  ;;  %v1298_v57 = vadd.f32 %v1297_v42, %v1296_v31  ;;  %v1359_v55 = vrot.slane %v1358_v51, 4 }
 0x271   : > { %v2154_v11 = vpop.eup %2153  ;;  %v1331_v41 = vadd.f32 %v1330_v60, %v1329_v5  ;;  %v1316_v59 = vrot.slane %v1315_v1, 4  ;;  %v1347_v63 = vmul.f32 %v2150_v43, %v2951_v16  ;;  %v1336_v22 = vsel %vm654_vm0, %v2152_v46, 0.0 }
 0x272   : > { %2155 = vrcp.f32 %v1293_v7  ;;  %v1314_v35 = vadd.f32 %v1313_v12, %v1312_v36  ;;  %v1299_v53 = vrot.slane %v1298_v57, 1  ;;  %v1337_v2 = vrot.slane %v1336_v22, 4 }
 0x273   : > { %2157 = vrcp.f32 %v1307_v21  ;;  %v1332_v6 = vrot.slane %v1331_v41, 2  ;;  %v1317_v24 = vadd.f32 %v1316_v59, %v1315_v1  ;;  %v1322_v3 = vsel %vm654_vm0, %v2154_v11, 0.0 }
 0x274   : > { %2159 = vrcp.f32 %v1314_v35  ;;  %v1300_v9 = vadd.f32 %v1299_v53, %v1298_v57  ;;  %v1338_v10 = vadd.f32 %v1337_v2, %v1336_v22  ;;  %v1323_v26 = vrot.slane %v1322_v3, 4 }
 0x275   : > { %v1333_v13 = vadd.f32 %v1332_v6, %v1331_v41  ;;  %v1318_v33 = vrot.slane %v1317_v24, 2  ;;  %v1355_v18 = vadd.f32 %v1354_v48, %v1353_v29  ;;  %v1360_v19 = vadd.f32 %v1359_v55, %v1358_v51 }
 0x276   : > { %2161 = vrcp.f32 %v1300_v9  ;;  %v1339_v16 = vrot.slane %v1338_v10, 2  ;;  %v1350_v47 = vmul.f32 %v2152_v46, %v2959_v49  ;;  %v1324_v40 = vadd.f32 %v1323_v26, %v1322_v3 }
 0x277   : > { %v1334_v8 = vrot.slane %v1333_v13, 1  ;;  %v1319_v50 = vadd.f32 %v1318_v33, %v1317_v24  ;;  %v1361_v25 = vrot.slane %v1360_v19, 2  ;;  %v1369_v28 = vadd.f32 %v1368_v39, %v1367_v20 }
 0x278   : > { %v1340_v34 = vadd.f32 %v1339_v16, %v1338_v10  ;;  %v1325_v52 = vrot.slane %v1324_v40, 2  ;;  %v1348_v54 = vmul.f32 %v2154_v11, %v2963_v4  ;;  %v1374_v31 = vadd.f32 %v1373_v17, %v2994_v23 }
 0x279   : > { %v1335_v43 = vadd.f32 %v1334_v8, %v1333_v13  ;;  %v1320_v5 = vrot.slane %v1319_v50, 1  ;;  %v1356_v0 = vrot.slane %v1355_v18, 1  ;;  %v1379_v29 = vsel %vm654_vm0, %v1347_v63, 0.0 }
 0x27a   : > { %v1341_v51 = vrot.slane %v1340_v34, 1  ;;  %v1326_v36 = vadd.f32 %v1325_v52, %v1324_v40  ;;  %v1362_v42 = vadd.f32 %v1361_v25, %v1360_v19  ;;  %v1375_v49 = vrot.slane %v1374_v31, 2 }
 0x27b   : > { %2163 = vrcp.f32 %v1335_v43  ;;  %v1321_v46 = vadd.f32 %v1320_v5, %v1319_v50  ;;  %v1370_v21 = vrot.slane %v1369_v28, 1  ;;  %v1380_v60 = vrot.slane %v1379_v29, 4 }
 0x27c   : > { %v1342_v20 = vadd.f32 %v1341_v51, %v1340_v34  ;;  %v1327_v39 = vrot.slane %v1326_v36, 1  ;;  %v1376_v1 = vadd.f32 %v1375_v49, %v1374_v31  ;;  %v1386_v4 = vsel %vm654_vm0, %v1348_v54, 0.0 }
 0x27d   : > { %2165 = vrcp.f32 %v1321_v46  ;;  %v1381_v23 = vadd.f32 %v1380_v60, %v1379_v29  ;;  %v1387_v17 = vrot.slane %v1386_v4, 4  ;;  %v1549_v48 = vrot.slane %v2997_v37, 2 }
 0x27e   : > { %2167 = vrcp.f32 %v1342_v20  ;;  %v1328_v7 = vadd.f32 %v1327_v39, %v1326_v36  ;;  %v1363_v12 = vrot.slane %v1362_v42, 1  ;;  %v1377_v57 = vrot.slane %v1376_v1, 1 }
 0x27f   : > { %v2156_v55 = vpop.eup %2155  ;;  %v1382_v11 = vrot.slane %v1381_v23, 2  ;;  %v1388_v41 = vadd.f32 %v1387_v17, %v1386_v4  ;;  %v1393_v59 = vsel %vm654_vm0, %v3004_v44, 0.0  ;;  %v1400_v63 = vsel %vm654_vm0, %v1350_v47, 0.0 }
 0x280   : > { %v2158_v22 = vpop.eup %2157  ;;  %2169 = vrcp.f32 %v1328_v7  ;;  %v1357_v35 = vadd.f32 %v1356_v0, %v1355_v18  ;;  %v1371_v53 = vadd.f32 %v1370_v21, %v1369_v28  ;;  %v1555_v2 = vadd.f32 %v1554_v38, %v2989_v15 }
 0x281   : > { %v2160_v6 = vpop.eup %2159  ;;  %v1383_v24 = vadd.f32 %v1382_v11, %v1381_v23  ;;  %v1389_v3 = vrot.slane %v1388_v41, 2  ;;  %v1394_v9 = vrot.slane %v1393_v59, 4  ;;  %v1401_v10 = vrot.slane %v1400_v63, 4 }
 0x282   : > { %v1415_v26 = vmul.f32 %v2156_v55, %v1357_v35  ;;  %v1364_v13 = vadd.f32 %v1363_v12, %v1362_v42  ;;  %v1378_v33 = vadd.f32 %v1377_v57, %v1376_v1  ;;  %v1536_v44 = vadd.f32 %v1535_v14, %v2955_v45 }
 0x283   : > { %v2162_v19 = vpop.eup %2161  ;;  %v1417_v16 = vmul.f32 %v2158_v22, %v1371_v53  ;;  %v1395_v18 = vadd.f32 %v1394_v9, %v1393_v59  ;;  %v1550_v47 = vadd.f32 %v1549_v48, %v2997_v37  ;;  %v1402_v40 = vadd.f32 %v1401_v10, %v1400_v63  ;;  %v1916_v9 = vld [vmem:[%s3152_s13] ss:$0 sm:$0xff] }
 0x284   : > { %v1416_v8 = vmul.f32 %v2162_v19, %v1364_v13  ;;  %v1418_v15 = vmul.f32 %v2160_v6, %v1378_v33  ;;  %v1390_v38 = vadd.f32 %v1389_v3, %v1388_v41  ;;  %v1556_v50 = vrot.slane %v1555_v2, 2  ;;  %v1669_v6 = vpop.xlane.xlu0 %1668 }
 0x285   : > { %v1531_v25 = vadd.f32 %v1530_v62, %v2968_v27  ;;  %v1384_v28 = vrot.slane %v1383_v24, 1  ;;  %v1396_v34 = vrot.slane %v1395_v18, 2  ;;  %v1403_v52 = vrot.slane %v1402_v40, 2 }
 0x286   : > { %v1560_v54 = vadd.f32 %v2966_v61, %v1415_v26  ;;  %v1561_v45 = vadd.f32 %v2971_v30, %v1416_v8  ;;  %v1537_v14 = vrot.slane %v1536_v44, 1  ;;  %v1543_v37 = vadd.f32 %v1542_v32, %v2979_v58 }
 0x287   : > { %v1562_v31 = vadd.f32 %v2973_v56, %v1417_v16  ;;  %v1397_v43 = vadd.f32 %v1396_v34, %v1395_v18  ;;  %v1551_v5 = vrot.slane %v1550_v47, 1  ;;  %v1404_v0 = vadd.f32 %v1403_v52, %v1402_v40 }
 0x288   : > { %v2164_v29 = vpop.eup %2163  ;;  %v1587_v27 = vsel %vm848_vm1, %v1561_v45, %v1560_v54  ;;  %v1563_v62 = vadd.f32 %v1531_v25, %v1418_v15  ;;  %v1391_v51 = vrot.slane %v1390_v38, 1  ;;  %v1557_v36 = vadd.f32 %v1556_v50, %v1555_v2 }
 0x289   : > { %v1588_v61 = vsel %vm851_vm2, %v1562_v31, %v1587_v27  ;;  %v1385_v42 = vadd.f32 %v1384_v28, %v1383_v24  ;;  %v1398_v30 = vrot.slane %v1397_v43, 1  ;;  %v1405_v49 = vrot.slane %v1404_v0, 1  ;;  %v1914_v24 = vld [vmem:[%s3151_s10] ss:$0 sm:$0xff]  ;;  %s2346_s10 = scalar_lea.vmem %s2345_s27, 256 }
 0x28a   : > { %v2166_v46 = vpop.eup %2165  ;;  %v1589_v21 = vsel %vm854_vm3, %v1563_v62, %v1588_v61  ;;  %v1544_v58 = vrot.slane %v1543_v37, 1  ;;  %v1538_v60 = vadd.f32 %v1537_v14, %v1536_v44  ;;  %v1392_v39 = vadd.f32 %v1391_v51, %v1390_v38  ;;  %p2348_p0 = scmp.lt.s32.totalorder %s2346_s10, %s2340_s0 }
 0x28b   : > { %v2168_v32 = vpop.eup %2167  ;;  %v1419_v56 = vmul.f32 %v2166_v46, %v1385_v42  ;;  %v1399_v20 = vadd.f32 %v1398_v30, %v1397_v43  ;;  %v1406_v1 = vadd.f32 %v1405_v49, %v1404_v0  ;;  %v1558_v4 = vrot.slane %v1557_v36, 1 }
 0x28c   : > { %v1552_v7 = vadd.f32 %v1551_v5, %v1550_v47  ;;  %v1545_v57 = vadd.f32 %v1544_v58, %v1543_v37  ;;  %vm1670_vm11 = vcmp.eq.f32.partialorder %v1669_v6, 0.0  ;;  %p2349_p3 = por %p2348_p0, %p2347_p12 }
 0x28d   : > { %v2170_v23 = vpop.eup %2169  ;;  %v1564_v17 = vadd.f32 %v1538_v60, %v1419_v56  ;;  %v1421_v48 = vmul.f32 %v2164_v29, %v1399_v20  ;;  %v1422_v55 = vmul.f32 %v2168_v32, %v1406_v1  ;;  %v1559_v41 = vadd.f32 %v1558_v4, %v1557_v36 }
 0x28e   : > { %v1420_v12 = vmul.f32 %v2170_v23, %v1392_v39  ;;  %p2350_p6 = pnand %p2349_p3, %p2343_p4 }
 0x28f   : > { %v1566_v59 = vadd.f32 %v1552_v7, %v1421_v48  ;;  %v1590_v63 = vsel %vm857_vm4, %v1564_v17, %v1589_v21  ;;  %v1567_v22 = vadd.f32 %v1559_v41, %v1422_v55 }
 0x290   : > { %v1565_v11 = vadd.f32 %v1545_v57, %v1420_v12 }
 0x292   : > { %v1591_v35 = vsel %vm860_vm5, %v1565_v11, %v1590_v63 }
 0x293   : > { %v1592_v53 = vsel %vm863_vm6, %v1566_v59, %v1591_v35 }
 0x294   : > { %v1593_v2 = vsel %vm866_vm7, %v1567_v22, %v1592_v53 }
 0x295   : > { %2005 = vmatmul.mubr.msk.f32.vlgmr.msra.gmra.mxu0 %vm654_vm0, %v1593_v2 }
 0x355   : > { %v1662_v3 = vpop.f32.mrf.mxu0 }
 0x356   : > { %v1663_v10 = vadd.f32 %v1914_v24, %v1662_v3 }
 0x357   : > { %v2006_v26 = vpop.f32.mrf.mxu0 }
 0x358   : > { %v1680_v13 = vsel %vm1670_vm11, %v1916_v9, %v1663_v10 }
 0x359   : > { %1681 = vst.msk [vmem:[%s590_s23] sm:$0xff] %vm654_vm0, %v1680_v13 }
 0x35a   : > { %2353 = shalt.err (!%p2350_p6)
}
 0x35b   : > { %s2354_s18 = scalar_lea.hbm %s3054_s1, 128  ;;  %s2358_s24 = scalar_lea.hbm %s3153_s22, 256 }
 0x35c   : > { %p2355_p10 = scmp.ne.s32.totalorder %s3054_s1, %s2354_s18  ;;  %p2359_p2 = scmp.lt.s32.totalorder %s3054_s1, %s3153_s22 }
 0x35d   : > { %p2360_p8 = scmp.lt.s32.totalorder %s2358_s24, %s2354_s18 }
 0x35e   : > { %p2356_p1 = pnand %p2355_p10, %p3154_p7 }
 0x35f   : > { %p2361_p9 = por %p2360_p8, %p2359_p2 }
 0x360   : > { %p2357_p5 = pneg %p2356_p1 }
 0x362   : > { %p2362_p11 = pnand %p2361_p9, %p2357_p5 }
 0x364   : > { %2365 = shalt.err (!%p2362_p11)
}
 0x365   : > { %2033 = dma.vmem_to_hbm [thread:$0]  (%p3154_p7), %s1697_s14, 128, %s3054_s1, %s1683_s19  }
 0x366 PF: > { %s1708_s28 = sand.u32 1, %s2408_s29   ;;  %p3155_p13 = scmp.ne.s32.totalorder %s3135_s17, 0 }
 0x367   : > { %p3156_p4 = scmp.ge.s32.totalorder %s2420_s16, 2  ;;  %s1709_s21 = scalar_lea.sflag [#allocation4], %s1708_s28 }
 0x369   : > { %p2059_p12 = pnand %p3156_p4, %p3155_p13 }
 0x36b   : > { %p2060_p0 = pneg %p2059_p12 }
 0x36d   : > { %2403 = dma.done.wait (%p2060_p0), %s1709_s21, 128  }
 0x36e   : > { %2405 = vsyncadd (%p2060_p0), %s1709_s21, 4294967168  ;;  %p31_p3 = scmp.ge.s32.totalorder %s2610_s26, 4   ;;  %s3157_s29 = smov %s2412_s30 }
 0x36f   : > { %s3158_s30 = smov %s2416_s15  ;;  %s3159_s15 = smov %s2621_s5 }
 0x370   : > { %s3160_s16 = smov %s2610_s26  ;;  %33 = sbr.rel (!%p31_p3) target bundleno = 19 (0x13), region = 152 }
 0x375   :  { %1714 = vsyncpa [#allocation3], 1 }
 0x376   :  { %1716 = vsyncpa [#allocation3 + $0x1], 1 }
 0x377   :  { %1717 = vsyncpa [#allocation8], 1 }
 0x378   :  { %1718 = vsyncpa [#allocation11], 1 }
 0x379   :  { %1719 = vsyncpa [#allocation14], 1 }
 0x37a   :  { %1720 = vsyncpa [#allocation4], 1 }
 0x37b   :  { %1722 = vsyncpa [#allocation4 + $0x1], 1 }
 0x37c   :  { %1723 = vsyncpa [#allocation5], 1 }
 0x37d   :  { %1725 = vsyncpa [#allocation5 + $0x1], 1 }

</bundles_post_ra>
